<compile_context>
chip_gen: v7x
topology: tpu7x:2x2x1
jax: 0.10.0
libtpu: 0.0.40
codegen_flags: <defaults>
</compile_context>

<pallas_src>
import functools
import numpy as np
import jax
import jax.numpy as jnp
from jax.experimental import pallas as pl
from jax.experimental.pallas import tpu as pltpu


# ----------------------------- Pallas kernel -----------------------------

def _nb1d_in_kernel(x_ref, w1_ref, b1_ref, w2_ref, b2_ref, w3_ref, b3_ref,
                    w4_ref, b4_ref, m_ref, o_ref, *, C, H, W, dilated, eps):
    """One batch sample.  x_ref block is (1, C, H*W): channels on sublanes, spatial on lanes."""
    HW = H * W
    x = x_ref[0].astype(jnp.float32)                              # (C, HW)

    def conv_h(src, w_r, b_r, d):
        # (3,1) conv: taps along H == flat shifts by d*W with zero padding (no wrap issues).
        z = jnp.zeros((C, d * W), jnp.float32)
        p = jnp.concatenate([z, src, z], axis=1)                  # (C, HW + 2dW)
        x3 = jnp.concatenate(
            [p[:, 0:HW], src, p[:, 2 * d * W:2 * d * W + HW]], axis=0)       # (3C, HW)
        return jnp.dot(w_r[...], x3, preferred_element_type=jnp.float32) + b_r[...]

    def conv_w(src, w_r, b_r, d, ml, mr):
        # (1,3) conv: taps along W == flat shifts by d; row-boundary wrap masked out.
        z = jnp.zeros((C, d), jnp.float32)
        p = jnp.concatenate([z, src, z], axis=1)                  # (C, HW + 2d)
        x3 = jnp.concatenate(
            [p[:, 0:HW] * ml, src, p[:, 2 * d:2 * d + HW] * mr], axis=0)     # (3C, HW)
        return jnp.dot(w_r[...], x3, preferred_element_type=jnp.float32) + b_r[...]

    def inst_norm(y):
        # InstanceNorm2d(affine=False): per-(sample, channel) stats over all H*W lanes.
        mean = jnp.sum(y, axis=1, keepdims=True) * (1.0 / HW)
        var = jnp.sum(y * y, axis=1, keepdims=True) * (1.0 / HW) - mean * mean
        return (y - mean) * jax.lax.rsqrt(var + eps)

    ml1, mr1 = m_ref[0:1, :], m_ref[1:2, :]
    mld, mrd = m_ref[2:3, :], m_ref[3:4, :]

    out = jnp.maximum(conv_h(x, w1_ref, b1_ref, 1), 0.0)              # conv3x1_1 + relu
    out = conv_w(out, w2_ref, b2_ref, 1, ml1, mr1)                    # conv1x3_1
    out = jnp.maximum(inst_norm(out), 0.0)                            # bn1 (IN) + relu
    out = jnp.maximum(conv_h(out, w3_ref, b3_ref, dilated), 0.0)      # conv3x1_2 + relu
    out = conv_w(out, w4_ref, b4_ref, dilated, mld, mrd)              # conv1x3_2
    out = inst_norm(out)                                              # bn2 (IN)
    # Dropout2d(p=0) is the identity.  Residual add + final ReLU.
    o_ref[0] = jnp.maximum(out + x, 0.0).astype(o_ref.dtype)


def non_bottleneck_1d_in(x, params, dilated, eps=1e-3):
    """x: (N, C, H, W) float32 (NCHW, same layout as the PyTorch module)."""
    N, C, H, W = x.shape
    HW = H * W
    x2 = x.reshape(N, C, HW)

    # {0,1} masks that kill the row-boundary wrap of the W-direction shifted taps.
    wpos = np.arange(HW) % W
    masks = jnp.asarray(np.stack(
        [wpos >= 1, wpos < W - 1, wpos >= dilated, wpos < W - dilated],
        axis=0).astype(np.float32))                               # (4, HW)

    kern = functools.partial(_nb1d_in_kernel, C=C, H=H, W=W, dilated=dilated, eps=eps)

    def rep(shape):                                               # replicated (un-tiled) operand
        return pl.BlockSpec(shape, lambda n: (0,) * len(shape))

    act_spec = pl.BlockSpec((1, C, HW), lambda n: (n, 0, 0))
    w_spec, b_spec = rep((C, 3 * C)), rep((C, 1))

    out = pl.pallas_call(
        kern,
        out_shape=jax.ShapeDtypeStruct((N, C, HW), x.dtype),
        grid_spec=pltpu.PrefetchScalarGridSpec(
            num_scalar_prefetch=0,
            grid=(N,),
            in_specs=[act_spec,
                      w_spec, b_spec, w_spec, b_spec,
                      w_spec, b_spec, w_spec, b_spec,
                      rep((4, HW))],
            out_specs=act_spec,
        ),
        compiler_params=pltpu.CompilerParams(dimension_semantics=("parallel",)),
    )(x2,
      params["w1"], params["b1"], params["w2"], params["b2"],
      params["w3"], params["b3"], params["w4"], params["b4"],
      masks)
    return out.reshape(N, C, H, W)


# ----------------------------- parameters -----------------------------
# Flat weight layout: w[o, t*C + ci] == torch_weight[o, ci, t] for tap t in {0,1,2},
# tap t looking at spatial offset (t-1)*dilation along the conv axis.

def init_params(key, C):
    ks = jax.random.split(key, 8)

    def conv(kw, kb):
        w = jax.random.normal(kw, (C, 3 * C), jnp.float32) / np.sqrt(3 * C)
        b = 0.05 * jax.random.normal(kb, (C, 1), jnp.float32)
        return w, b

    w1, b1 = conv(ks[0], ks[1])
    w2, b2 = conv(ks[2], ks[3])
    w3, b3 = conv(ks[4], ks[5])
    w4, b4 = conv(ks[6], ks[7])
    return dict(w1=w1, b1=b1, w2=w2, b2=b2, w3=w3, b3=b3, w4=w4, b4=b4)


# ----------------------------- pure-JAX reference -----------------------------

def _conv_ref(x, w_flat, b, axis, dil):
    C = x.shape[1]
    w = jnp.transpose(w_flat.reshape(C, 3, C), (0, 2, 1))         # (O, I, 3)
    if axis == "h":
        w = w[:, :, :, None]                                      # (O, I, 3, 1)
        pad, rhs_dil = ((dil, dil), (0, 0)), (dil, 1)
    else:
        w = w[:, :, None, :]                                      # (O, I, 1, 3)
        pad, rhs_dil = ((0, 0), (dil, dil)), (1, dil)
    y = jax.lax.conv_general_dilated(
        x, w, window_strides=(1, 1), padding=pad, rhs_dilation=rhs_dil,
        dimension_numbers=("NCHW", "OIHW", "NCHW"),
        precision=jax.lax.Precision.HIGHEST)
    return y + b.reshape(1, C, 1, 1)


def _inst_norm_ref(x, eps):
    mean = jnp.mean(x, axis=(2, 3), keepdims=True)
    var = jnp.var(x, axis=(2, 3), keepdims=True)
    return (x - mean) * jax.lax.rsqrt(var + eps)


def non_bottleneck_1d_in_ref(x, p, dilated, eps=1e-3):
    out = jax.nn.relu(_conv_ref(x, p["w1"], p["b1"], "h", 1))
    out = _conv_ref(out, p["w2"], p["b2"], "w", 1)
    out = jax.nn.relu(_inst_norm_ref(out, eps))
    out = jax.nn.relu(_conv_ref(out, p["w3"], p["b3"], "h", dilated))
    out = _conv_ref(out, p["w4"], p["b4"], "w", dilated)
    out = _inst_norm_ref(out, eps)
    return jax.nn.relu(out + x)


# ----------------------------- main -----------------------------

if __name__ == "__main__":
    key = jax.random.PRNGKey(0)
    kp, kx = jax.random.split(key)

    N, C, H, W = 2, 32, 16, 16
    dilated = 2

    params = init_params(kp, C)
    x = jax.random.normal(kx, (N, C, H, W), jnp.float32)

    fwd = jax.jit(lambda xx: non_bottleneck_1d_in(xx, params, dilated))
    out = jax.block_until_ready(fwd(x))

    assert out.shape == (N, C, H, W), out.shape
    assert bool(jnp.all(jnp.isfinite(out)))

    ref = non_bottleneck_1d_in_ref(x, params, dilated)
    err = float(jnp.max(jnp.abs(out - ref)))
    assert err < 3e-3, f"mismatch vs reference: {err}"

    print("KERNEL_OK")
</pallas_src>

<mosaic_0001>
module attributes {stable_mosaic.version = 11 : i64} {
  func.func @_nb1d_in_kernel(%arg0: i32, %arg1: memref<1x32x256xf32, #tpu.memory_space<vmem>>, %arg2: memref<32x96xf32, #tpu.memory_space<vmem>>, %arg3: memref<32x1xf32, #tpu.memory_space<vmem>>, %arg4: memref<32x96xf32, #tpu.memory_space<vmem>>, %arg5: memref<32x1xf32, #tpu.memory_space<vmem>>, %arg6: memref<32x96xf32, #tpu.memory_space<vmem>>, %arg7: memref<32x1xf32, #tpu.memory_space<vmem>>, %arg8: memref<32x96xf32, #tpu.memory_space<vmem>>, %arg9: memref<32x1xf32, #tpu.memory_space<vmem>>, %arg10: memref<4x256xf32, #tpu.memory_space<vmem>>, %arg11: memref<1x32x256xf32, #tpu.memory_space<vmem>>) attributes {dimension_semantics = [#tpu.dimension_semantics<parallel>], iteration_bounds = array<i64: 2>, scalar_prefetch = 0 : i64, scratch_operands = 0 : i64, tpu.core_type = #tpu.core_type<tc>, window_params = [{transform_indices = @transform_0, window_bounds = array<i64: 1, 32, 256>}, {pipeline_mode = #tpu.pipeline_mode<synchronous>, transform_indices = @transform_1, window_bounds = array<i64: 32, 96>}, {pipeline_mode = #tpu.pipeline_mode<synchronous>, transform_indices = @transform_2, window_bounds = array<i64: 32, 1>}, {pipeline_mode = #tpu.pipeline_mode<synchronous>, transform_indices = @transform_3, window_bounds = array<i64: 32, 96>}, {pipeline_mode = #tpu.pipeline_mode<synchronous>, transform_indices = @transform_4, window_bounds = array<i64: 32, 1>}, {pipeline_mode = #tpu.pipeline_mode<synchronous>, transform_indices = @transform_5, window_bounds = array<i64: 32, 96>}, {pipeline_mode = #tpu.pipeline_mode<synchronous>, transform_indices = @transform_6, window_bounds = array<i64: 32, 1>}, {pipeline_mode = #tpu.pipeline_mode<synchronous>, transform_indices = @transform_7, window_bounds = array<i64: 32, 96>}, {pipeline_mode = #tpu.pipeline_mode<synchronous>, transform_indices = @transform_8, window_bounds = array<i64: 32, 1>}, {pipeline_mode = #tpu.pipeline_mode<synchronous>, transform_indices = @transform_9, window_bounds = array<i64: 4, 256>}, {transform_indices = @transform_10, window_bounds = array<i64: 1, 32, 256>}]} {
    %c0 = arith.constant 0 : index
    %c0_0 = arith.constant 0 : index
    %c0_1 = arith.constant 0 : index
    %0 = vector.load %arg1[%c0, %c0_0, %c0_1] : memref<1x32x256xf32, #tpu.memory_space<vmem>>, vector<1x32x256xf32>
    %1 = vector.shape_cast %0 : vector<1x32x256xf32> to vector<32x256xf32>
    %c0_2 = arith.constant 0 : index
    %c0_3 = arith.constant 0 : index
    %2 = vector.load %arg10[%c0_2, %c0_3] : memref<4x256xf32, #tpu.memory_space<vmem>>, vector<1x256xf32>
    %c1 = arith.constant 1 : index
    %c0_4 = arith.constant 0 : index
    %3 = vector.load %arg10[%c1, %c0_4] : memref<4x256xf32, #tpu.memory_space<vmem>>, vector<1x256xf32>
    %c2 = arith.constant 2 : index
    %c0_5 = arith.constant 0 : index
    %4 = vector.load %arg10[%c2, %c0_5] : memref<4x256xf32, #tpu.memory_space<vmem>>, vector<1x256xf32>
    %c3 = arith.constant 3 : index
    %c0_6 = arith.constant 0 : index
    %5 = vector.load %arg10[%c3, %c0_6] : memref<4x256xf32, #tpu.memory_space<vmem>>, vector<1x256xf32>
    %cst = arith.constant 0.000000e+00 : f32
    %6 = vector.broadcast %cst : f32 to vector<32x16xf32>
    %7 = tpu.concatenate %6, %1, %6 in 1 : vector<32x16xf32>, vector<32x256xf32>, vector<32x16xf32> -> vector<32x288xf32>
    %8 = vector.extract_strided_slice %7 {offsets = [0, 0], sizes = [32, 256], strides = [1, 1]} : vector<32x288xf32> to vector<32x256xf32>
    %9 = vector.extract_strided_slice %7 {offsets = [0, 32], sizes = [32, 256], strides = [1, 1]} : vector<32x288xf32> to vector<32x256xf32>
    %10 = tpu.concatenate %8, %1, %9 in 0 : vector<32x256xf32>, vector<32x256xf32>, vector<32x256xf32> -> vector<96x256xf32>
    %c0_7 = arith.constant 0 : index
    %c0_8 = arith.constant 0 : index
    %11 = vector.load %arg2[%c0_7, %c0_8] : memref<32x96xf32, #tpu.memory_space<vmem>>, vector<32x96xf32>
    %cst_9 = arith.constant dense<0.000000e+00> : vector<32x256xf32>
    %12 = tpu.matmul %11, %10, %cst_9 {dimension_numbers = #tpu.dot_dimension_numbers<[1], [0], [0], [1], [0, 0, 1, 1], [], []>} : vector<32x96xf32>, vector<96x256xf32>, vector<32x256xf32> -> vector<32x256xf32>
    %c0_10 = arith.constant 0 : index
    %c0_11 = arith.constant 0 : index
    %13 = vector.load %arg3[%c0_10, %c0_11] : memref<32x1xf32, #tpu.memory_space<vmem>>, vector<32x1xf32>
    %14 = vector.broadcast %13 : vector<32x1xf32> to vector<32x256xf32>
    %15 = arith.addf %12, %14 : vector<32x256xf32>
    %cst_12 = arith.constant 0.000000e+00 : f32
    %16 = vector.broadcast %cst_12 : f32 to vector<32x256xf32>
    %17 = arith.maximumf %15, %16 : vector<32x256xf32>
    %cst_13 = arith.constant 0.000000e+00 : f32
    %18 = vector.broadcast %cst_13 : f32 to vector<32x1xf32>
    %19 = tpu.concatenate %18, %17, %18 in 1 : vector<32x1xf32>, vector<32x256xf32>, vector<32x1xf32> -> vector<32x258xf32>
    %20 = vector.extract_strided_slice %19 {offsets = [0, 0], sizes = [32, 256], strides = [1, 1]} : vector<32x258xf32> to vector<32x256xf32>
    %21 = vector.broadcast %2 : vector<1x256xf32> to vector<32x256xf32>
    %22 = arith.mulf %20, %21 : vector<32x256xf32>
    %23 = vector.extract_strided_slice %19 {offsets = [0, 2], sizes = [32, 256], strides = [1, 1]} : vector<32x258xf32> to vector<32x256xf32>
    %24 = vector.broadcast %3 : vector<1x256xf32> to vector<32x256xf32>
    %25 = arith.mulf %23, %24 : vector<32x256xf32>
    %26 = tpu.concatenate %22, %17, %25 in 0 : vector<32x256xf32>, vector<32x256xf32>, vector<32x256xf32> -> vector<96x256xf32>
    %c0_14 = arith.constant 0 : index
    %c0_15 = arith.constant 0 : index
    %27 = vector.load %arg4[%c0_14, %c0_15] : memref<32x96xf32, #tpu.memory_space<vmem>>, vector<32x96xf32>
    %cst_16 = arith.constant dense<0.000000e+00> : vector<32x256xf32>
    %28 = tpu.matmul %27, %26, %cst_16 {dimension_numbers = #tpu.dot_dimension_numbers<[1], [0], [0], [1], [0, 0, 1, 1], [], []>} : vector<32x96xf32>, vector<96x256xf32>, vector<32x256xf32> -> vector<32x256xf32>
    %c0_17 = arith.constant 0 : index
    %c0_18 = arith.constant 0 : index
    %29 = vector.load %arg5[%c0_17, %c0_18] : memref<32x1xf32, #tpu.memory_space<vmem>>, vector<32x1xf32>
    %30 = vector.broadcast %29 : vector<32x1xf32> to vector<32x256xf32>
    %31 = arith.addf %28, %30 : vector<32x256xf32>
    %cst_19 = arith.constant dense<0.000000e+00> : vector<32xf32>
    %32 = vector.multi_reduction <add>, %31, %cst_19 [1] : vector<32x256xf32> to vector<32xf32>
    %33 = vector.shape_cast %32 : vector<32xf32> to vector<32x1xf32>
    %cst_20 = arith.constant 3.906250e-03 : f32
    %34 = vector.broadcast %cst_20 : f32 to vector<32x1xf32>
    %35 = arith.mulf %33, %34 : vector<32x1xf32>
    %36 = arith.mulf %31, %31 : vector<32x256xf32>
    %cst_21 = arith.constant dense<0.000000e+00> : vector<32xf32>
    %37 = vector.multi_reduction <add>, %36, %cst_21 [1] : vector<32x256xf32> to vector<32xf32>
    %38 = vector.shape_cast %37 : vector<32xf32> to vector<32x1xf32>
    %cst_22 = arith.constant 3.906250e-03 : f32
    %39 = vector.broadcast %cst_22 : f32 to vector<32x1xf32>
    %40 = arith.mulf %38, %39 : vector<32x1xf32>
    %41 = arith.mulf %35, %35 : vector<32x1xf32>
    %42 = arith.subf %40, %41 : vector<32x1xf32>
    %43 = vector.broadcast %35 : vector<32x1xf32> to vector<32x256xf32>
    %44 = arith.subf %31, %43 : vector<32x256xf32>
    %cst_23 = arith.constant 1.000000e-03 : f32
    %45 = vector.broadcast %cst_23 : f32 to vector<32x1xf32>
    %46 = arith.addf %42, %45 : vector<32x1xf32>
    %47 = math.rsqrt %46 : vector<32x1xf32>
    %48 = vector.broadcast %47 : vector<32x1xf32> to vector<32x256xf32>
    %49 = arith.mulf %44, %48 : vector<32x256xf32>
    %cst_24 = arith.constant 0.000000e+00 : f32
    %50 = vector.broadcast %cst_24 : f32 to vector<32x256xf32>
    %51 = arith.maximumf %49, %50 : vector<32x256xf32>
    %cst_25 = arith.constant 0.000000e+00 : f32
    %52 = vector.broadcast %cst_25 : f32 to vector<32x32xf32>
    %53 = tpu.concatenate %52, %51, %52 in 1 : vector<32x32xf32>, vector<32x256xf32>, vector<32x32xf32> -> vector<32x320xf32>
    %54 = vector.extract_strided_slice %53 {offsets = [0, 0], sizes = [32, 256], strides = [1, 1]} : vector<32x320xf32> to vector<32x256xf32>
    %55 = vector.extract_strided_slice %53 {offsets = [0, 64], sizes = [32, 256], strides = [1, 1]} : vector<32x320xf32> to vector<32x256xf32>
    %56 = tpu.concatenate %54, %51, %55 in 0 : vector<32x256xf32>, vector<32x256xf32>, vector<32x256xf32> -> vector<96x256xf32>
    %c0_26 = arith.constant 0 : index
    %c0_27 = arith.constant 0 : index
    %57 = vector.load %arg6[%c0_26, %c0_27] : memref<32x96xf32, #tpu.memory_space<vmem>>, vector<32x96xf32>
    %cst_28 = arith.constant dense<0.000000e+00> : vector<32x256xf32>
    %58 = tpu.matmul %57, %56, %cst_28 {dimension_numbers = #tpu.dot_dimension_numbers<[1], [0], [0], [1], [0, 0, 1, 1], [], []>} : vector<32x96xf32>, vector<96x256xf32>, vector<32x256xf32> -> vector<32x256xf32>
    %c0_29 = arith.constant 0 : index
    %c0_30 = arith.constant 0 : index
    %59 = vector.load %arg7[%c0_29, %c0_30] : memref<32x1xf32, #tpu.memory_space<vmem>>, vector<32x1xf32>
    %60 = vector.broadcast %59 : vector<32x1xf32> to vector<32x256xf32>
    %61 = arith.addf %58, %60 : vector<32x256xf32>
    %cst_31 = arith.constant 0.000000e+00 : f32
    %62 = vector.broadcast %cst_31 : f32 to vector<32x256xf32>
    %63 = arith.maximumf %61, %62 : vector<32x256xf32>
    %cst_32 = arith.constant 0.000000e+00 : f32
    %64 = vector.broadcast %cst_32 : f32 to vector<32x2xf32>
    %65 = tpu.concatenate %64, %63, %64 in 1 : vector<32x2xf32>, vector<32x256xf32>, vector<32x2xf32> -> vector<32x260xf32>
    %66 = vector.extract_strided_slice %65 {offsets = [0, 0], sizes = [32, 256], strides = [1, 1]} : vector<32x260xf32> to vector<32x256xf32>
    %67 = vector.broadcast %4 : vector<1x256xf32> to vector<32x256xf32>
    %68 = arith.mulf %66, %67 : vector<32x256xf32>
    %69 = vector.extract_strided_slice %65 {offsets = [0, 4], sizes = [32, 256], strides = [1, 1]} : vector<32x260xf32> to vector<32x256xf32>
    %70 = vector.broadcast %5 : vector<1x256xf32> to vector<32x256xf32>
    %71 = arith.mulf %69, %70 : vector<32x256xf32>
    %72 = tpu.concatenate %68, %63, %71 in 0 : vector<32x256xf32>, vector<32x256xf32>, vector<32x256xf32> -> vector<96x256xf32>
    %c0_33 = arith.constant 0 : index
    %c0_34 = arith.constant 0 : index
    %73 = vector.load %arg8[%c0_33, %c0_34] : memref<32x96xf32, #tpu.memory_space<vmem>>, vector<32x96xf32>
    %cst_35 = arith.constant dense<0.000000e+00> : vector<32x256xf32>
    %74 = tpu.matmul %73, %72, %cst_35 {dimension_numbers = #tpu.dot_dimension_numbers<[1], [0], [0], [1], [0, 0, 1, 1], [], []>} : vector<32x96xf32>, vector<96x256xf32>, vector<32x256xf32> -> vector<32x256xf32>
    %c0_36 = arith.constant 0 : index
    %c0_37 = arith.constant 0 : index
    %75 = vector.load %arg9[%c0_36, %c0_37] : memref<32x1xf32, #tpu.memory_space<vmem>>, vector<32x1xf32>
    %76 = vector.broadcast %75 : vector<32x1xf32> to vector<32x256xf32>
    %77 = arith.addf %74, %76 : vector<32x256xf32>
    %cst_38 = arith.constant dense<0.000000e+00> : vector<32xf32>
    %78 = vector.multi_reduction <add>, %77, %cst_38 [1] : vector<32x256xf32> to vector<32xf32>
    %79 = vector.shape_cast %78 : vector<32xf32> to vector<32x1xf32>
    %cst_39 = arith.constant 3.906250e-03 : f32
    %80 = vector.broadcast %cst_39 : f32 to vector<32x1xf32>
    %81 = arith.mulf %79, %80 : vector<32x1xf32>
    %82 = arith.mulf %77, %77 : vector<32x256xf32>
    %cst_40 = arith.constant dense<0.000000e+00> : vector<32xf32>
    %83 = vector.multi_reduction <add>, %82, %cst_40 [1] : vector<32x256xf32> to vector<32xf32>
    %84 = vector.shape_cast %83 : vector<32xf32> to vector<32x1xf32>
    %cst_41 = arith.constant 3.906250e-03 : f32
    %85 = vector.broadcast %cst_41 : f32 to vector<32x1xf32>
    %86 = arith.mulf %84, %85 : vector<32x1xf32>
    %87 = arith.mulf %81, %81 : vector<32x1xf32>
    %88 = arith.subf %86, %87 : vector<32x1xf32>
    %89 = vector.broadcast %81 : vector<32x1xf32> to vector<32x256xf32>
    %90 = arith.subf %77, %89 : vector<32x256xf32>
    %cst_42 = arith.constant 1.000000e-03 : f32
    %91 = vector.broadcast %cst_42 : f32 to vector<32x1xf32>
    %92 = arith.addf %88, %91 : vector<32x1xf32>
    %93 = math.rsqrt %92 : vector<32x1xf32>
    %94 = vector.broadcast %93 : vector<32x1xf32> to vector<32x256xf32>
    %95 = arith.mulf %90, %94 : vector<32x256xf32>
    %96 = arith.addf %95, %1 : vector<32x256xf32>
    %cst_43 = arith.constant 0.000000e+00 : f32
    %97 = vector.broadcast %cst_43 : f32 to vector<32x256xf32>
    %98 = arith.maximumf %96, %97 : vector<32x256xf32>
    %c0_44 = arith.constant 0 : index
    %c0_45 = arith.constant 0 : index
    %c0_46 = arith.constant 0 : index
    %99 = vector.load %arg11[%c0_44, %c0_45, %c0_46] : memref<1x32x256xf32, #tpu.memory_space<vmem>>, vector<1x32x256xf32>
    %100 = vector.shape_cast %99 : vector<1x32x256xf32> to vector<32x256xf32>
    %101 = vector.shape_cast %98 : vector<32x256xf32> to vector<1x32x256xf32>
    tpu.vector_store %arg11[%c0_44, %c0_45, %c0_46], %101 {strides = array<i32>} : memref<1x32x256xf32, #tpu.memory_space<vmem>>, vector<1x32x256xf32>,
    return
  }
  func.func @transform_0(%arg0: i32) -> (i32, i32, i32) {
    %c0_i32 = arith.constant 0 : i32
    %c0_i32_0 = arith.constant 0 : i32
    %c0_i32_1 = arith.constant 0 : i32
    return %arg0, %c0_i32, %c0_i32_0 : i32, i32, i32
  }
  func.func @transform_1(%arg0: i32) -> (i32, i32) {
    %c0_i32 = arith.constant 0 : i32
    %c0_i32_0 = arith.constant 0 : i32
    %c0_i32_1 = arith.constant 0 : i32
    return %c0_i32, %c0_i32_0 : i32, i32
  }
  func.func @transform_2(%arg0: i32) -> (i32, i32) {
    %c0_i32 = arith.constant 0 : i32
    %c0_i32_0 = arith.constant 0 : i32
    %c0_i32_1 = arith.constant 0 : i32
    return %c0_i32, %c0_i32_0 : i32, i32
  }
  func.func @transform_3(%arg0: i32) -> (i32, i32) {
    %c0_i32 = arith.constant 0 : i32
    %c0_i32_0 = arith.constant 0 : i32
    %c0_i32_1 = arith.constant 0 : i32
    return %c0_i32, %c0_i32_0 : i32, i32
  }
  func.func @transform_4(%arg0: i32) -> (i32, i32) {
    %c0_i32 = arith.constant 0 : i32
    %c0_i32_0 = arith.constant 0 : i32
    %c0_i32_1 = arith.constant 0 : i32
    return %c0_i32, %c0_i32_0 : i32, i32
  }
  func.func @transform_5(%arg0: i32) -> (i32, i32) {
    %c0_i32 = arith.constant 0 : i32
    %c0_i32_0 = arith.constant 0 : i32
    %c0_i32_1 = arith.constant 0 : i32
    return %c0_i32, %c0_i32_0 : i32, i32
  }
  func.func @transform_6(%arg0: i32) -> (i32, i32) {
    %c0_i32 = arith.constant 0 : i32
    %c0_i32_0 = arith.constant 0 : i32
    %c0_i32_1 = arith.constant 0 : i32
    return %c0_i32, %c0_i32_0 : i32, i32
  }
  func.func @transform_7(%arg0: i32) -> (i32, i32) {
    %c0_i32 = arith.constant 0 : i32
    %c0_i32_0 = arith.constant 0 : i32
    %c0_i32_1 = arith.constant 0 : i32
    return %c0_i32, %c0_i32_0 : i32, i32
  }
  func.func @transform_8(%arg0: i32) -> (i32, i32) {
    %c0_i32 = arith.constant 0 : i32
    %c0_i32_0 = arith.constant 0 : i32
    %c0_i32_1 = arith.constant 0 : i32
    return %c0_i32, %c0_i32_0 : i32, i32
  }
  func.func @transform_9(%arg0: i32) -> (i32, i32) {
    %c0_i32 = arith.constant 0 : i32
    %c0_i32_0 = arith.constant 0 : i32
    %c0_i32_1 = arith.constant 0 : i32
    return %c0_i32, %c0_i32_0 : i32, i32
  }
  func.func @transform_10(%arg0: i32) -> (i32, i32, i32) {
    %c0_i32 = arith.constant 0 : i32
    %c0_i32_0 = arith.constant 0 : i32
    %c0_i32_1 = arith.constant 0 : i32
    return %arg0, %c0_i32, %c0_i32_0 : i32, i32, i32
  }
}

</mosaic_0001>

<bundles_post_ra>
// kernel: _lambda_.1
= control target key start
LH: loop header
LB: loop body
LE: loop exit
PB: predicated region body
PF: predicated region fallthrough
CT: control target
= control target key end

     0   :  { %s2062_s13 = smov 0   ;;  %s2575_s0 = inlined_call_operand.vmem [shape: f32[2,32,256], index: 0, kind: input, shape index: {}]   ;;  %s2576_s1 = inlined_call_operand.vmem [shape: f32[32,96], index: 1, kind: input, shape index: {}]   ;;  %s2577_s2 = inlined_call_operand.vmem [shape: f32[32,1], index: 2, kind: input, shape index: {}]   ;;  %s2578_s3 = inlined_call_operand.vmem [shape: f32[32,96], index: 3, kind: input, shape index: {}]   ;;  %s2579_s4 = inlined_call_operand.vmem [shape: f32[32,1], index: 4, kind: input, shape index: {}]   ;;  %s2580_s5 = inlined_call_operand.vmem [shape: f32[32,96], index: 5, kind: input, shape index: {}]   ;;  %s2581_s6 = inlined_call_operand.vmem [shape: f32[32,1], index: 6, kind: input, shape index: {}]   ;;  %s2582_s7 = inlined_call_operand.vmem [shape: f32[32,96], index: 7, kind: input, shape index: {}]   ;;  %s2583_s8 = inlined_call_operand.vmem [shape: f32[32,1], index: 8, kind: input, shape index: {}]   ;;  %s2584_s9 = inlined_call_operand.vmem [shape: f32[4,256], index: 9, kind: input, shape index: {}]   ;;  %s2585_s10 = inlined_call_operand.vmem [shape: f32[2,32,256], index: 10, kind: output, shape index: {}]  }
   0x1 LB: > { %s1635_s14 = sadd.s32 4294967295, %s1994_s13   ;;  %p1639_p0 = scmp.ge.s32.totalorder %s1994_s13, 1  ;;  %s1994_s13 = sphi %s2062_s13, %s20_s13  }
   0x2   : > { %p312_p1 = scmp.lt.s32.totalorder %s1994_s13, 3 }
   0x4   : > { %p313_p2 = pnand %p1639_p0, %p312_p1 }
   0x5   : > { %p350_p3 = scmp.lt.s32.totalorder (!%p313_p2), %s1635_s14, 1  ;;  %s1996_s19 = smov (!%p313_p2), 16   ;;  %vm399_vm0 = vcmask (!%p313_p2), 130048   ;;  %v1998_v43 = vmov (!%p313_p2), 0.0   ;;  %v477_v52 = vld [vmem:[%s2577_s2] sm:$0xff] (!%p313_p2)  ;;  %v478_v53 = vld [vmem:[%s2577_s2 + $0x8] sm:$0xff] (!%p313_p2) }
   0x6   : > { %316 = sbr.rel (%p313_p2) target bundleno = 2262 (0x8d6), region = 60  ;;  %s1997_s20 = smov (!%p313_p2), 96   ;;  %vm2117_vm1 = vmneg (!%p313_p2), %vm399_vm0  ;;  %577 = vmatprep.mubr.f32.mxu0 (!%p313_p2), %v1998_v43  ;;  %865 = vmatprep.mubr.f32.mxu1 (!%p313_p2), %v1998_v43  ;;  %v1999_v54 = vmov (!%p313_p2), 0   ;;  %v480_v55 = vld [vmem:[%s2577_s2 + $0x18] sm:$0xff] (!%p313_p2)  ;;  %v479_v56 = vld [vmem:[%s2577_s2 + $0x10] sm:$0xff] (!%p313_p2)  ;;  %vm456_vm3 = vcmask (!%p313_p2), 785408  }
   0x7   : > { %vm1686_vm2 = vmpackc.low (!%p313_p2), %vm2117_vm1, %vm2117_vm1  ;;  %1852 = vset.pattern.permute.xlu0 (!%p313_p2), %v1999_v54  ;;  %1853 = vset.pattern.permute.xlu1 (!%p313_p2), %v1999_v54  ;;  %s2000_s23 = smov (!%p313_p2), 2   ;;  %s2001_s24 = smov (!%p313_p2), 1   ;;  %vm691_vm4 = vcmask (!%p313_p2), 15360   ;;  %vm634_vm5 = vcmask (!%p313_p2), 7168   ;;  %vm744_vm6 = vcmask (!%p313_p2), 1031168   ;;  %vm994_vm7 = vcmask (!%p313_p2), 261120  }
   0x8   : > { %s2002_s27 = smov (!%p313_p2), 126   ;;  %s2003_s29 = smov (!%p313_p2), 32   ;;  %vm2341_vm8 = vmneg (!%p313_p2), %vm994_vm7  ;;  %vm1051_vm10 = vcmask (!%p313_p2), 523264   ;;  %vm1285_vm11 = vcmask (!%p313_p2), 31744   ;;  %vm1338_vm12 = vcmask (!%p313_p2), 1014784  }
   0x9   : > { %s2004_s30 = smov (!%p313_p2), 64   ;;  %vm1736_vm9 = vmpackc.low (!%p313_p2), %vm2341_vm8, %vm2341_vm8  ;;  %s2005_s17 = smov (!%p313_p2), 4  }
   0xd   : > { %s2591_s14 = smov (!%p350_p3, %s1635_s14), 1 }
   0xe   : > { %s1681_s15 = sshll.u32 %s2591_s14, 6 }
   0xf   : > { %s2078_s18 = scalar_lea.vmem %s2575_s0, %s1681_s15 }
  0x10   : > { %v2081_v0 = vld [vmem:[%s2078_s18] sm:$0xff]  ;;  %v2084_v1 = vld [vmem:[%s2078_s18 + $0x8] sm:$0xff]  ;;  %v2095_v5 = vld [vmem:[%s2078_s18 + $0x10] sm:$0xff] }
  0x11   : > { %v2087_v2 = vld [vmem:[%s2078_s18 + $0x20] sm:$0xff]  ;;  %v1802_v3 = vpack.i.bf16 %v2084_v1, %v2081_v0  ;;  %v2092_v4 = vld [vmem:[%s2078_s18 + $0x28] sm:$0xff]  ;;  %v2098_v6 = vld [vmem:[%s2078_s18 + $0x18] sm:$0xff]  ;;  %v1695_v49 = vpack.c.bf16 %v2095_v5, %v2081_v0 }
  0x12   : > { %v1812_v7 = vpack.i.bf16 %v2092_v4, %v2087_v2  ;;  %v2103_v8 = vld [vmem:[%s2078_s18 + $0x30] sm:$0xff]  ;;  %v2106_v9 = vld [vmem:[%s2078_s18 + $0x38] sm:$0xff]  ;;  %v1807_v10 = vpack.i.bf16 %v2098_v6, %v2095_v5  ;;  %v1693_v46 = vpack.c.bf16 %v2098_v6, %v2084_v1 }
  0x13   : > { %1803 = vrot.lane.b32.xlu0 %v1802_v3, %s1996_s19  ;;  %v1817_v11 = vpack.i.bf16 %v2106_v9, %v2103_v8  ;;  %v1697_v50 = vpack.c.bf16 %v2106_v9, %v2092_v4  ;;  %v1699_v51 = vpack.c.bf16 %v2103_v8, %v2087_v2 }
  0x14   : > { %1813 = vrot.lane.b32.xlu1 %v1812_v7, %s1996_s19 }
  0x17   : > { %1808 = vrot.lane.b32.xlu0 %v1807_v10, %s1996_s19 }
  0x18   : > { %1818 = vrot.lane.b32.xlu1 %v1817_v11, %s1996_s19 }
  0x85   : > { %v1804_v12 = vpop.permute.xlu0 %1803 }
  0x86   : > { %v1806_v13 = vunpack.i.h.bf16 %v1804_v12  ;;  %v1805_v14 = vunpack.i.l.bf16 %v1804_v12  ;;  %v1814_v15 = vpop.permute.xlu1 %1813 }
  0x87   : > { %v1816_v16 = vunpack.i.h.bf16 %v1814_v15  ;;  %v1815_v17 = vunpack.i.l.bf16 %v1814_v15 }
  0x88   : > { %v420_v18 = vsel %vm399_vm0, %v1806_v13, 0.0  ;;  %v400_v19 = vsel %vm399_vm0, %v1805_v14, %v1806_v13  ;;  %v416_v32 = vsel %vm399_vm0, 0.0, %v1805_v14 }
  0x89   : > { %v1809_v20 = vpop.permute.xlu0 %1808  ;;  %v1822_v21 = vpack.i.bf16 %v420_v18, %v400_v19  ;;  %v422_v25 = vsel %vm399_vm0, %v1816_v16, 0.0  ;;  %v402_v29 = vsel %vm399_vm0, %v1815_v17, %v1816_v16  ;;  %v418_v44 = vsel %vm399_vm0, 0.0, %v1815_v17 }
  0x8a   : > { %v1811_v22 = vunpack.i.h.bf16 %v1809_v20  ;;  %v1810_v23 = vunpack.i.l.bf16 %v1809_v20  ;;  %v1819_v24 = vpop.permute.xlu1 %1818  ;;  %v1837_v39 = vpack.i.bf16 %v422_v25, %v402_v29  ;;  %v475_v25 = vld [vmem:[%s2576_s1 + $0x10] sm:$0xff] }
  0x8b   : > { %1823 = vrot.lane.b32.xlu0 %v1822_v21, %s1997_s20  ;;  %v1821_v26 = vunpack.i.h.bf16 %v1819_v24  ;;  %v1820_v27 = vunpack.i.l.bf16 %v1819_v24  ;;  %v474_v24 = vld [vmem:[%s2576_s1 + $0x8] sm:$0xff] }
  0x8c   : > { %v421_v30 = vsel %vm399_vm0, %v1811_v22, 0.0  ;;  %v401_v31 = vsel %vm399_vm0, %v1810_v23, %v1811_v22  ;;  %v417_v33 = vsel %vm399_vm0, 0.0, %v1810_v23  ;;  %v1685_v40 = vpack.c.bf16 %v1810_v23, %v1805_v14  ;;  %v473_v23 = vld [vmem:[%s2576_s1] sm:$0xff] }
  0x8d   : > { %v423_v34 = vsel %vm399_vm0, %v1821_v26, 0.0  ;;  %v1827_v35 = vpack.i.bf16 %v421_v30, %v401_v31  ;;  %v1832_v36 = vpack.i.bf16 %v417_v33, %v416_v32  ;;  %v1683_v37 = vpack.c.bf16 %v401_v31, %v400_v19  ;;  %v1644_v30 = vld [vmem:[%s2584_s9 + $0x1] ss:$4 sm:$0x3] }
  0x8e   : > { %v403_v38 = vsel %vm399_vm0, %v1820_v27, %v1821_v26  ;;  %v419_v45 = vsel %vm399_vm0, 0.0, %v1820_v27  ;;  %v1690_v47 = vpack.c.bf16 %v1820_v27, %v1815_v17  ;;  %v476_v26 = vld [vmem:[%s2576_s1 + $0x18] sm:$0xff]  ;;  %v660_v27 = vlaneseq }
  0x8f   : > { %1828 = vrot.lane.b32.xlu1 %v1827_v35, %s1997_s20  ;;  %1833 = vrot.lane.b32.xlu0 %v1832_v36, %s1997_s20  ;;  %v1688_v41 = vpack.c.bf16 %v403_v38, %v402_v29  ;;  %v1842_v42 = vpack.i.bf16 %v423_v34, %v403_v38  ;;  %v1847_v48 = vpack.i.bf16 %v419_v45, %v418_v44 }
  0x90   : > { %1684 = vmatprep.subr.bf16.mxu0 %v1683_v37  ;;  %v661_v28 = vshrl.u32 %v660_v27, 7 }
  0x91   : > { %1687 = vmatpush1.bf16.msk.msra.mxu0 %vm1686_vm2, %v1685_v40 }
  0x92   : > { %1689 = vmatprep.subr.bf16.mxu0 %v1688_v41  ;;  %v2198_v29 = vsub.s32 0, %v661_v28  ;;  %v2203_v31 = vsub.s32 1, %v661_v28 }
  0x93   : > { %1838 = vrot.lane.b32.xlu1 %v1837_v39, %s1997_s20  ;;  %1843 = vrot.lane.b32.xlu0 %v1842_v42, %s1997_s20 }
  0x94   : > { %v682_v32 = vrot.slane %v1644_v30, %v2198_v29  ;;  %v686_v33 = vrot.slane %v1644_v30, %v2203_v31 }
  0x95   : > { %1692 = vmatpush1.bf16.msk.msra.mxu0 %vm1686_vm2, %v1690_v47 }
  0x96   : > { %1694 = vmatprep.subr.bf16.mxu0 %v1693_v46 }
  0x97   : > { %1848 = vrot.lane.b32.xlu1 %v1847_v48, %s1997_s20  ;;  %483 = vperm.xlu0 %1852, %v477_v52  }
  0x99   : > { %1696 = vmatpush1.bf16.msra.mxu0 %v1695_v49 }
  0x9a   : > { %1698 = vmatprep.subr.bf16.mxu0 %v1697_v50 }
  0x9b   : > { %488 = vperm.xlu1 %1853, %v478_v53   ;;  %498 = vperm.xlu0 %1852, %v480_v55  }
  0x9d   : > { %1700 = vmatpush1.bf16.msra.mxu0 %v1699_v51 }
  0x9f   : > { %493 = vperm.xlu1 %1853, %v479_v56   ;;  %689 = vrot.lane.b32.xlu0 %v686_v33, %s2000_s23 }
  0xa3   : > { %687 = vrot.lane.b32.xlu1 %v682_v32, %s2000_s23 }
  0xfd   : > { %v1824_v57 = vpop.permute.xlu0 %1823 }
  0xfe   : > { %v1826_v58 = vunpack.i.h.bf16 %v1824_v57  ;;  %v1825_v59 = vunpack.i.l.bf16 %v1824_v57 }
 0x100   : > { %v458_v2 = vsel %vm456_vm3, %v1825_v59, %v1826_v58 }
 0x101   : > { %v1829_v60 = vpop.permute.xlu1 %1828  ;;  %v1834_v61 = vpop.permute.xlu0 %1833 }
 0x102   : > { %v1831_v62 = vunpack.i.h.bf16 %v1829_v60  ;;  %v1830_v63 = vunpack.i.l.bf16 %v1829_v60  ;;  %v1836_v0 = vunpack.i.h.bf16 %v1834_v61  ;;  %v1835_v1 = vunpack.i.l.bf16 %v1834_v61 }
 0x104   : > { %v460_v3 = vsel %vm456_vm3, %v1830_v63, %v1831_v62  ;;  %v457_v4 = vsel %vm456_vm3, %v1835_v1, %v1825_v59  ;;  %v459_v5 = vsel %vm456_vm3, %v1836_v0, %v1830_v63 }
 0x105   : > { %v1839_v6 = vpop.permute.xlu1 %1838  ;;  %v1844_v7 = vpop.permute.xlu0 %1843  ;;  %v1701_v8 = vpack.c.bf16 %v460_v3, %v458_v2  ;;  %v1703_v9 = vpack.c.bf16 %v459_v5, %v457_v4  ;;  %v368_v5 = vld [vmem:[%s2584_s9] ss:$4 sm:$0x3] }
 0x106   : > { %v1841_v10 = vunpack.i.h.bf16 %v1839_v6  ;;  %v1840_v11 = vunpack.i.l.bf16 %v1839_v6  ;;  %v1846_v12 = vunpack.i.h.bf16 %v1844_v7  ;;  %v1845_v13 = vunpack.i.l.bf16 %v1844_v7 }
 0x107   : > { %1702 = vmatprep.subr.bf16.mxu0 %v1701_v8 }
 0x108   : > { %1704 = vmatpush1.bf16.msra.mxu0 %v1703_v9  ;;  %v462_v14 = vsel %vm456_vm3, %v1840_v11, %v1841_v10  ;;  %v464_v15 = vsel %vm456_vm3, %v1845_v13, %v1846_v12  ;;  %v667_v12 = vrot.slane %v368_v5, %v2203_v31 }
 0x109   : > { %v1849_v16 = vpop.permute.xlu1 %1848  ;;  %v1705_v17 = vpack.c.bf16 %v464_v15, %v462_v14 }
 0x10a   : > { %v1851_v18 = vunpack.i.h.bf16 %v1849_v16  ;;  %v1850_v19 = vunpack.i.l.bf16 %v1849_v16  ;;  %v663_v16 = vrot.slane %v368_v5, %v2198_v29  ;;  %v767_v5 = vld [vmem:[%s2579_s4 + $0x10] sm:$0xff] }
 0x10b   : > { %1706 = vmatprep.subr.bf16.mxu0 %v1705_v17 }
 0x10c   : > { %v461_v20 = vsel %vm456_vm3, %v1850_v19, %v1840_v11  ;;  %v463_v21 = vsel %vm456_vm3, %v1851_v18, %v1845_v13 }
 0x10d   : > { %v1707_v22 = vpack.c.bf16 %v463_v21, %v461_v20 }
 0x10f   : > { %1708 = vmatpush1.bf16.msra.mxu0 %v1707_v22 }
 0x112   : > { %1655 = vmatmul.mubr.msk.f32.vlgmr.msra.gmra.mrb[0].mxu0 %vm456_vm3, %v473_v23 }
 0x113   : > { %583 = vmatprep.mubr.f32.mxu0 %v1998_v43 }
 0x116   : > { %1656 = vmatmul.mubr.msk.f32.gmra.mrb[2].mxu0 %vm456_vm3, %v474_v24  ;;  %v484_v34 = vpop.permute.xlu0 %483 }
 0x117   : > { %589 = vmatprep.mubr.f32.mxu0 %v1998_v43 }
 0x11a   : > { %1657 = vmatmul.mubr.msk.f32.gmra.mrb[4].mxu0 %vm456_vm3, %v475_v25  ;;  %v489_v38 = vpop.permute.xlu1 %488  ;;  %v499_v57 = vpop.permute.xlu0 %498 }
 0x11b   : > { %595 = vmatprep.mubr.f32.mxu0 %v1998_v43 }
 0x11e   : > { %1658 = vmatmul.mubr.msk.f32.gmra.mrb[6].mxu0 %vm456_vm3, %v476_v26  ;;  %v494_v48 = vpop.permute.xlu1 %493  ;;  %v690_v4 = vpop.permute.xlu0 %689 }
 0x11f   : > { %1172 = vmatprep.mubr.f32.mxu0 %v1998_v43 }
 0x122   : > { %v688_v3 = vpop.permute.xlu1 %687 }
 0x123   : > { %v692_v7 = vsel %vm691_vm4, %v688_v3, %v690_v4 }
 0x1e5   : > { %v579_v35 = vpop.f32.mrb[0].mxu0 }
 0x1e6   : > { %v580_v36 = vadd.f32 %v579_v35, %v484_v34  ;;  %v581_v37 = vpop.f32.mrb[1].mxu0 }
 0x1e7   : > { %v582_v39 = vadd.f32 %v581_v37, %v484_v34 }
 0x1e8   : > { %v602_v40 = vmax.f32 %v580_v36, 0.0 }
 0x1e9   : > { %v603_v41 = vmax.f32 %v582_v39, 0.0  ;;  %v585_v42 = vpop.f32.mrb[2].mxu0 }
 0x1ea   : > { %v586_v44 = vadd.f32 %v585_v42, %v489_v38  ;;  %v587_v45 = vpop.f32.mrb[3].mxu0  ;;  %618 = vrot.lane.b32.xlu1 %v602_v40, %s2001_s24 }
 0x1eb   : > { %v588_v46 = vadd.f32 %v587_v45, %v489_v38  ;;  %620 = vrot.lane.b32.xlu0 %v603_v41, %s2001_s24 }
 0x1ec   : > { %v604_v47 = vmax.f32 %v586_v44, 0.0 }
 0x1ed   : > { %v605_v49 = vmax.f32 %v588_v46, 0.0  ;;  %v591_v50 = vpop.f32.mrb[4].mxu0 }
 0x1ee   : > { %v2209_v51 = vpack.c.bf16 %v604_v47, %v602_v40  ;;  %v592_v52 = vadd.f32 %v591_v50, %v494_v48  ;;  %v593_v53 = vpop.f32.mrb[5].mxu0  ;;  %622 = vrot.lane.b32.xlu1 %v604_v47, %s2001_s24 }
 0x1ef   : > { %v2211_v54 = vpack.c.bf16 %v605_v49, %v603_v41  ;;  %v594_v55 = vadd.f32 %v593_v53, %v494_v48  ;;  %624 = vrot.lane.b32.xlu0 %v605_v49, %s2001_s24 }
 0x1f0   : > { %v606_v56 = vmax.f32 %v592_v52, 0.0 }
 0x1f1   : > { %v607_v58 = vmax.f32 %v594_v55, 0.0  ;;  %v597_v59 = vpop.f32.mrb[6].mxu0 }
 0x1f2   : > { %v598_v60 = vadd.f32 %v597_v59, %v499_v57  ;;  %v599_v61 = vpop.f32.mrb[7].mxu0  ;;  %626 = vrot.lane.b32.xlu1 %v606_v56, %s2001_s24 }
 0x1f3   : > { %v600_v62 = vadd.f32 %v599_v61, %v499_v57  ;;  %628 = vrot.lane.b32.xlu0 %v607_v58, %s2001_s24 }
 0x1f4   : > { %v608_v63 = vmax.f32 %v598_v60, 0.0 }
 0x1f5   : > { %v609_v0 = vmax.f32 %v600_v62, 0.0 }
 0x1f6   : > { %v2213_v1 = vpack.c.bf16 %v608_v63, %v606_v56  ;;  %630 = vrot.lane.b32.xlu1 %v608_v63, %s2001_s24 }
 0x1f7   : > { %v2215_v2 = vpack.c.bf16 %v609_v0, %v607_v58  ;;  %632 = vrot.lane.b32.xlu0 %v609_v0, %s2001_s24  ;;  %v766_v0 = vld [vmem:[%s2579_s4 + $0x8] sm:$0xff]  ;;  %s2550_s24 = scalar_lea.vmem %s2585_s10, %s1681_s15 }
 0x25c   : > { %v619_v6 = vpop.permute.xlu1 %618 }
 0x25d   : > { %v621_v8 = vpop.permute.xlu0 %620  ;;  %v651_v9 = vsel %vm634_vm5, 0.0, %v619_v6 }
 0x25e   : > { %v635_v10 = vsel %vm634_vm5, %v619_v6, %v621_v8  ;;  %v655_v11 = vsel %vm634_vm5, %v621_v8, 0.0  ;;  %v696_v17 = vmul.f32 %v688_v3, %v651_v9  ;;  %v670_v33 = vmul.f32 %v663_v16, %v651_v9 }
 0x25f   : > { %v697_v13 = vmul.f32 %v692_v7, %v635_v10  ;;  %v698_v14 = vmul.f32 %v690_v4, %v655_v11  ;;  %v671_v24 = vmul.f32 %v667_v12, %v635_v10 }
 0x260   : > { %v623_v15 = vpop.permute.xlu1 %622 }
 0x261   : > { %v652_v18 = vsel %vm634_vm5, 0.0, %v623_v15  ;;  %v625_v19 = vpop.permute.xlu0 %624  ;;  %v1854_v20 = vpack.i.bf16 %v698_v14, %v697_v13 }
 0x262   : > { %v699_v21 = vmul.f32 %v688_v3, %v652_v18  ;;  %v636_v22 = vsel %vm634_vm5, %v623_v15, %v625_v19  ;;  %v656_v23 = vsel %vm634_vm5, %v625_v19, 0.0  ;;  %v672_v25 = vmul.f32 %v663_v16, %v652_v18 }
 0x263   : > { %v700_v26 = vmul.f32 %v692_v7, %v636_v22  ;;  %v701_v27 = vmul.f32 %v690_v4, %v656_v23  ;;  %1855 = vrot.lane.b32.xlu1 %v1854_v20, %s2002_s27  ;;  %v673_v28 = vmul.f32 %v667_v12, %v636_v22 }
 0x264   : > { %v627_v30 = vpop.permute.xlu1 %626  ;;  %v1859_v32 = vpack.i.bf16 %v699_v21, %v696_v17  ;;  %v1711_v42 = vpack.c.bf16 %v672_v25, %v670_v33 }
 0x265   : > { %v629_v34 = vpop.permute.xlu0 %628  ;;  %v1864_v35 = vpack.i.bf16 %v701_v27, %v700_v26  ;;  %v1709_v36 = vpack.c.bf16 %v673_v28, %v671_v24  ;;  %v653_v37 = vsel %vm634_vm5, 0.0, %v627_v30 }
 0x266   : > { %v637_v38 = vsel %vm634_vm5, %v627_v30, %v629_v34  ;;  %v657_v39 = vsel %vm634_vm5, %v629_v34, 0.0  ;;  %v702_v45 = vmul.f32 %v688_v3, %v653_v37  ;;  %v674_v60 = vmul.f32 %v663_v16, %v653_v37  ;;  %v761_v34 = vld [vmem:[%s2578_s3] sm:$0xff]  ;;  %v764_v37 = vld [vmem:[%s2578_s3 + $0x18] sm:$0xff] }
 0x267   : > { %v703_v40 = vmul.f32 %v692_v7, %v637_v38  ;;  %v704_v41 = vmul.f32 %v690_v4, %v657_v39  ;;  %1860 = vrot.lane.b32.xlu1 %v1859_v32, %s2002_s27  ;;  %1865 = vrot.lane.b32.xlu0 %v1864_v35, %s2002_s27  ;;  %v675_v49 = vmul.f32 %v667_v12, %v637_v38  ;;  %v762_v35 = vld [vmem:[%s2578_s3 + $0x8] sm:$0xff] }
 0x268   : > { %1710 = vmatprep.subr.bf16.mxu1 %v1709_v36  ;;  %v631_v44 = vpop.permute.xlu1 %630  ;;  %v763_v36 = vld [vmem:[%s2578_s3 + $0x10] sm:$0xff] }
 0x269   : > { %1712 = vmatpush1.bf16.msra.mxu1 %v1711_v42  ;;  %v654_v46 = vsel %vm634_vm5, 0.0, %v631_v44  ;;  %v633_v47 = vpop.permute.xlu0 %632  ;;  %v1869_v48 = vpack.i.bf16 %v704_v41, %v703_v40 }
 0x26a   : > { %v705_v50 = vmul.f32 %v688_v3, %v654_v46  ;;  %v638_v52 = vsel %vm634_vm5, %v631_v44, %v633_v47  ;;  %v658_v53 = vsel %vm634_vm5, %v633_v47, 0.0  ;;  %v676_v55 = vmul.f32 %v663_v16, %v654_v46  ;;  %v765_v3 = vld [vmem:[%s2579_s4] sm:$0xff] }
 0x26b   : > { %v677_v56 = vmul.f32 %v667_v12, %v638_v52  ;;  %v706_v57 = vmul.f32 %v692_v7, %v638_v52  ;;  %v707_v58 = vmul.f32 %v690_v4, %v658_v53  ;;  %1870 = vrot.lane.b32.xlu0 %v1869_v48, %s2002_s27  ;;  %v768_v4 = vld [vmem:[%s2579_s4 + $0x18] sm:$0xff] }
 0x26c   : > { %v1879_v59 = vpack.i.bf16 %v705_v50, %v702_v45  ;;  %v1715_v63 = vpack.c.bf16 %v676_v55, %v674_v60 }
 0x26d   : > { %v1874_v61 = vpack.i.bf16 %v707_v58, %v706_v57  ;;  %v1713_v62 = vpack.c.bf16 %v677_v56, %v675_v49 }
 0x26f   : > { %1880 = vrot.lane.b32.xlu0 %v1879_v59, %s2002_s27  ;;  %1875 = vrot.lane.b32.xlu1 %v1874_v61, %s2002_s27 }
 0x270   : > { %1714 = vmatprep.subr.bf16.mxu1 %v1713_v62 }
 0x271   : > { %1716 = vmatpush1.bf16.msra.mxu1 %v1715_v63 }
 0x272   : > { %1718 = vmatprep.subr.bf16.mxu1 %v2211_v54 }
 0x273   : > { %776 = vperm.xlu0 %1852, %v766_v0   ;;  %771 = vperm.xlu1 %1853, %v765_v3  }
 0x275   : > { %1720 = vmatpush1.bf16.msra.mxu1 %v2209_v51 }
 0x276   : > { %1722 = vmatprep.subr.bf16.mxu1 %v2215_v2 }
 0x277   : > { %786 = vperm.xlu0 %1852, %v768_v4   ;;  %781 = vperm.xlu1 %1853, %v767_v5  }
 0x279   : > { %1724 = vmatpush1.bf16.msra.mxu1 %v2213_v1 }
 0x2d5   : > { %v1856_v6 = vpop.permute.xlu1 %1855 }
 0x2d6   : > { %v1858_v54 = vunpack.i.h.bf16 %v1856_v6  ;;  %v1857_v7 = vunpack.i.l.bf16 %v1856_v6 }
 0x2d8   : > { %v746_v14 = vsel %vm744_vm6, %v1857_v7, %v1858_v54 }
 0x2d9   : > { %v1866_v8 = vpop.permute.xlu0 %1865  ;;  %v1861_v9 = vpop.permute.xlu1 %1860 }
 0x2da   : > { %v1868_v10 = vunpack.i.h.bf16 %v1866_v8  ;;  %v1867_v11 = vunpack.i.l.bf16 %v1866_v8  ;;  %v1863_v12 = vunpack.i.h.bf16 %v1861_v9  ;;  %v1862_v13 = vunpack.i.l.bf16 %v1861_v9 }
 0x2dc   : > { %v748_v51 = vsel %vm744_vm6, %v1867_v11, %v1868_v10  ;;  %v745_v2 = vsel %vm744_vm6, %v1862_v13, %v1857_v7  ;;  %v747_v15 = vsel %vm744_vm6, %v1863_v12, %v1867_v11 }
 0x2dd   : > { %v1871_v16 = vpop.permute.xlu0 %1870  ;;  %v1725_v1 = vpack.c.bf16 %v748_v51, %v746_v14  ;;  %v1727_v17 = vpack.c.bf16 %v747_v15, %v745_v2 }
 0x2de   : > { %v1873_v18 = vunpack.i.h.bf16 %v1871_v16  ;;  %v1872_v19 = vunpack.i.l.bf16 %v1871_v16 }
 0x2df   : > { %1726 = vmatprep.subr.bf16.mxu1 %v1725_v1 }
 0x2e0   : > { %1728 = vmatpush1.bf16.msra.mxu1 %v1727_v17  ;;  %v750_v26 = vsel %vm744_vm6, %v1872_v19, %v1873_v18 }
 0x2e1   : > { %v1881_v20 = vpop.permute.xlu0 %1880  ;;  %v1876_v21 = vpop.permute.xlu1 %1875 }
 0x2e2   : > { %v1883_v22 = vunpack.i.h.bf16 %v1881_v20  ;;  %v1882_v23 = vunpack.i.l.bf16 %v1881_v20  ;;  %v1878_v24 = vunpack.i.h.bf16 %v1876_v21  ;;  %v1877_v25 = vunpack.i.l.bf16 %v1876_v21 }
 0x2e4   : > { %v752_v27 = vsel %vm744_vm6, %v1877_v25, %v1878_v24  ;;  %v749_v28 = vsel %vm744_vm6, %v1882_v23, %v1872_v19  ;;  %v751_v30 = vsel %vm744_vm6, %v1883_v22, %v1877_v25 }
 0x2e5   : > { %v1729_v32 = vpack.c.bf16 %v752_v27, %v750_v26  ;;  %v1731_v33 = vpack.c.bf16 %v751_v30, %v749_v28 }
 0x2e7   : > { %1730 = vmatprep.subr.bf16.mxu1 %v1729_v32 }
 0x2e8   : > { %1732 = vmatpush1.bf16.msra.mxu1 %v1731_v33 }
 0x2eb   : > { %1659 = vmatmul.mubr.msk.f32.vlgmr.msra.gmra.mrb[0].mxu1 %vm456_vm3, %v761_v34 }
 0x2ec   : > { %871 = vmatprep.mubr.f32.mxu1 %v1998_v43 }
 0x2ef   : > { %1660 = vmatmul.mubr.msk.f32.gmra.mrb[2].mxu1 %vm456_vm3, %v762_v35 }
 0x2f0   : > { %877 = vmatprep.mubr.f32.mxu1 %v1998_v43 }
 0x2f2   : > { %v772_v38 = vpop.permute.xlu1 %771  ;;  %v777_v45 = vpop.permute.xlu0 %776 }
 0x2f3   : > { %1661 = vmatmul.mubr.msk.f32.gmra.mrb[4].mxu1 %vm456_vm3, %v763_v36 }
 0x2f4   : > { %883 = vmatprep.mubr.f32.mxu1 %v1998_v43 }
 0x2f6   : > { %v782_v58 = vpop.permute.xlu1 %781  ;;  %v787_v0 = vpop.permute.xlu0 %786 }
 0x2f7   : > { %1662 = vmatmul.mubr.msk.f32.gmra.mrb[6].mxu1 %vm456_vm3, %v764_v37 }
 0x2f8   : > { %1459 = vmatprep.mubr.f32.mxu1 %v1998_v43 }
 0x3be   : > { %v867_v39 = vpop.f32.mrb[0].mxu1 }
 0x3bf   : > { %v2285_v40 = vadd.f32 %v867_v39, %v772_v38  ;;  %v869_v41 = vpop.f32.mrb[1].mxu1 }
 0x3c0   : > { %v2287_v42 = vadd.f32 %v869_v41, %v772_v38 }
 0x3c1   : > { %v906_v44 = vmul.f32 %v2285_v40, %v2285_v40 }
 0x3c2   : > { %v873_v46 = vpop.f32.mrb[2].mxu1  ;;  %v890_v47 = vadd.f32 %v2287_v42, %v2285_v40  ;;  %v907_v48 = vmul.f32 %v2287_v42, %v2287_v42 }
 0x3c3   : > { %v2295_v49 = vadd.f32 %v873_v46, %v777_v45  ;;  %v875_v50 = vpop.f32.mrb[3].mxu1 }
 0x3c4   : > { %v2297_v52 = vadd.f32 %v875_v50, %v777_v45  ;;  %891 = vadd.xlane.f32.xlu1 %v890_v47  ;;  %v914_v53 = vadd.f32 %v907_v48, %v906_v44 }
 0x3c5   : > { %v908_v55 = vmul.f32 %v2295_v49, %v2295_v49 }
 0x3c6   : > { %v879_v56 = vpop.f32.mrb[4].mxu1  ;;  %915 = vadd.xlane.f32.xlu0 %v914_v53  ;;  %v909_v57 = vmul.f32 %v2297_v52, %v2297_v52  ;;  %v893_v62 = vadd.f32 %v2297_v52, %v2295_v49 }
 0x3c7   : > { %v881_v59 = vpop.f32.mrb[5].mxu1  ;;  %v2303_v60 = vadd.f32 %v879_v56, %v782_v58 }
 0x3c8   : > { %v2305_v61 = vadd.f32 %v881_v59, %v782_v58  ;;  %v917_v63 = vadd.f32 %v909_v57, %v908_v55 }
 0x3c9   : > { %v910_v7 = vmul.f32 %v2303_v60, %v2303_v60 }
 0x3ca   : > { %v885_v3 = vpop.f32.mrb[6].mxu1  ;;  %894 = vadd.xlane.f32.xlu0 %v893_v62  ;;  %918 = vadd.xlane.f32.xlu1 %v917_v63  ;;  %v896_v54 = vadd.f32 %v2305_v61, %v2303_v60  ;;  %v911_v8 = vmul.f32 %v2305_v61, %v2305_v61 }
 0x3cb   : > { %v2309_v4 = vadd.f32 %v885_v3, %v787_v0  ;;  %v887_v5 = vpop.f32.mrb[7].mxu1 }
 0x3cc   : > { %v2311_v6 = vadd.f32 %v887_v5, %v787_v0  ;;  %v920_v12 = vadd.f32 %v911_v8, %v910_v7 }
 0x3cd   : > { %v912_v10 = vmul.f32 %v2309_v4, %v2309_v4 }
 0x3ce   : > { %897 = vadd.xlane.f32.xlu0 %v896_v54  ;;  %v899_v9 = vadd.f32 %v2311_v6, %v2309_v4  ;;  %v913_v11 = vmul.f32 %v2311_v6, %v2311_v6 }
 0x3d0   : > { %900 = vadd.xlane.f32.xlu1 %v899_v9  ;;  %v923_v13 = vadd.f32 %v913_v11, %v912_v10 }
 0x3d2   : > { %921 = vadd.xlane.f32.xlu0 %v920_v12 }
 0x3d4   : > { %924 = vadd.xlane.f32.xlu1 %v923_v13 }
 0x451   : > { %v892_v14 = vpop.xlane.xlu1 %891 }
 0x452   : > { %v902_v51 = vmul.f32 0.00390625, %v892_v14 }
 0x453   : > { %v916_v2 = vpop.xlane.xlu0 %915 }
 0x454   : > { %v926_v15 = vmul.f32 0.00390625, %v916_v2  ;;  %v930_v16 = vmul.f32 %v902_v51, %v902_v51  ;;  %v938_v38 = vsub.f32 %v2285_v40, %v902_v51  ;;  %v939_v39 = vsub.f32 %v2287_v42, %v902_v51 }
 0x456   : > { %v934_v1 = vsub.f32 %v926_v15, %v930_v16 }
 0x457   : > { %v895_v17 = vpop.xlane.xlu0 %894  ;;  %v919_v18 = vpop.xlane.xlu1 %918 }
 0x458   : > { %v946_v19 = vadd.f32 0.001, %v934_v1  ;;  %v903_v20 = vmul.f32 0.00390625, %v895_v17  ;;  %v927_v22 = vmul.f32 0.00390625, %v919_v18 }
 0x45a   : > { %1964 = vrsqrt.f32 %v946_v19  ;;  %v931_v21 = vmul.f32 %v903_v20, %v903_v20  ;;  %v940_v55 = vsub.f32 %v2295_v49, %v903_v20  ;;  %v941_v56 = vsub.f32 %v2297_v52, %v903_v20 }
 0x45b   : > { %v898_v23 = vpop.xlane.xlu0 %897 }
 0x45c   : > { %v935_v24 = vsub.f32 %v927_v22, %v931_v21  ;;  %v904_v25 = vmul.f32 0.00390625, %v898_v23  ;;  %v1069_v23 = vld [vmem:[%s2580_s5 + $0x8] sm:$0xff] }
 0x45d   : > { %v901_v26 = vpop.xlane.xlu1 %900 }
 0x45e   : > { %v947_v27 = vadd.f32 0.001, %v935_v24  ;;  %v905_v28 = vmul.f32 0.00390625, %v901_v26  ;;  %v932_v32 = vmul.f32 %v904_v25, %v904_v25  ;;  %v942_v63 = vsub.f32 %v2303_v60, %v904_v25 }
 0x45f   : > { %v922_v30 = vpop.xlane.xlu0 %921  ;;  %v943_v0 = vsub.f32 %v2305_v61, %v904_v25 }
 0x460   : > { %1966 = vrsqrt.f32 %v947_v27  ;;  %v928_v33 = vmul.f32 0.00390625, %v922_v30  ;;  %v933_v36 = vmul.f32 %v905_v28, %v905_v28  ;;  %v944_v52 = vsub.f32 %v2309_v4, %v905_v28 }
 0x461   : > { %v925_v34 = vpop.xlane.xlu1 %924  ;;  %v945_v7 = vsub.f32 %v2311_v6, %v905_v28 }
 0x462   : > { %v936_v35 = vsub.f32 %v928_v33, %v932_v32  ;;  %v929_v37 = vmul.f32 0.00390625, %v925_v34 }
 0x464   : > { %v1965_v41 = vpop.eup %1964  ;;  %v948_v44 = vadd.f32 0.001, %v936_v35  ;;  %v937_v45 = vsub.f32 %v929_v37, %v933_v36 }
 0x465   : > { %v954_v46 = vmul.f32 %v1965_v41, %v938_v38  ;;  %v955_v47 = vmul.f32 %v1965_v41, %v939_v39 }
 0x466   : > { %1968 = vrsqrt.f32 %v948_v44  ;;  %v949_v48 = vadd.f32 0.001, %v937_v45 }
 0x467   : > { %v962_v50 = vmax.f32 %v954_v46, 0.0  ;;  %v963_v53 = vmax.f32 %v955_v47, 0.0 }
 0x468   : > { %1970 = vrsqrt.f32 %v949_v48 }
 0x469   : > { %v1884_v57 = vpack.i.bf16 %v963_v53, %v962_v50 }
 0x46a   : > { %v1967_v58 = vpop.eup %1966 }
 0x46b   : > { %1885 = vrot.lane.b32.xlu0 %v1884_v57, %s2003_s29  ;;  %v956_v40 = vmul.f32 %v1967_v58, %v940_v55  ;;  %v957_v42 = vmul.f32 %v1967_v58, %v941_v56  ;;  %v1072_v58 = vld [vmem:[%s2581_s6] sm:$0xff] }
 0x46d   : > { %v964_v59 = vmax.f32 %v956_v40, 0.0  ;;  %v965_v62 = vmax.f32 %v957_v42, 0.0  ;;  %v1073_v40 = vld [vmem:[%s2581_s6 + $0x8] sm:$0xff]  ;;  %v1074_v42 = vld [vmem:[%s2581_s6 + $0x10] sm:$0xff] }
 0x46f   : > { %v1889_v3 = vpack.i.bf16 %v965_v62, %v964_v59  ;;  %v2331_v5 = vpack.c.bf16 %v965_v62, %v963_v53  ;;  %v2333_v54 = vpack.c.bf16 %v964_v59, %v962_v50  ;;  %v1075_v59 = vld [vmem:[%s2581_s6 + $0x18] sm:$0xff] }
 0x470   : > { %v1969_v49 = vpop.eup %1968 }
 0x471   : > { %1890 = vrot.lane.b32.xlu1 %v1889_v3, %s2003_s29  ;;  %v958_v8 = vmul.f32 %v1969_v49, %v942_v63  ;;  %v959_v9 = vmul.f32 %v1969_v49, %v943_v0 }
 0x472   : > { %v1971_v10 = vpop.eup %1970 }
 0x473   : > { %v966_v11 = vmax.f32 %v958_v8, 0.0  ;;  %v967_v12 = vmax.f32 %v959_v9, 0.0  ;;  %v960_v13 = vmul.f32 %v1971_v10, %v944_v52  ;;  %v961_v60 = vmul.f32 %v1971_v10, %v945_v7 }
 0x475   : > { %v1894_v14 = vpack.i.bf16 %v967_v12, %v966_v11  ;;  %v968_v61 = vmax.f32 %v960_v13, 0.0  ;;  %v969_v51 = vmax.f32 %v961_v60, 0.0 }
 0x477   : > { %1895 = vrot.lane.b32.xlu1 %v1894_v14, %s2003_s29  ;;  %v1899_v2 = vpack.i.bf16 %v969_v51, %v968_v61  ;;  %v1747_v15 = vpack.c.bf16 %v969_v51, %v967_v12  ;;  %v1749_v16 = vpack.c.bf16 %v968_v61, %v966_v11 }
 0x479   : > { %1900 = vrot.lane.b32.xlu0 %v1899_v2, %s2003_s29 }
 0x4dd   : > { %v1886_v4 = vpop.permute.xlu0 %1885 }
 0x4de   : > { %v1888_v1 = vunpack.i.h.bf16 %v1886_v4  ;;  %v1887_v6 = vunpack.i.l.bf16 %v1886_v4 }
 0x4e0   : > { %v1015_v17 = vsel %vm994_vm7, %v1888_v1, 0.0  ;;  %v995_v18 = vsel %vm994_vm7, %v1887_v6, %v1888_v1  ;;  %v1011_v25 = vsel %vm994_vm7, 0.0, %v1887_v6 }
 0x4e1   : > { %v1904_v19 = vpack.i.bf16 %v1015_v17, %v995_v18 }
 0x4e3   : > { %1905 = vrot.lane.b32.xlu1 %v1904_v19, %s2004_s30  ;;  %v1891_v20 = vpop.permute.xlu1 %1890 }
 0x4e4   : > { %v1893_v21 = vunpack.i.h.bf16 %v1891_v20  ;;  %v1892_v22 = vunpack.i.l.bf16 %v1891_v20 }
 0x4e6   : > { %v1016_v24 = vsel %vm994_vm7, %v1893_v21, 0.0  ;;  %v1012_v26 = vsel %vm994_vm7, 0.0, %v1892_v22  ;;  %v996_v27 = vsel %vm994_vm7, %v1892_v22, %v1893_v21  ;;  %v1735_v33 = vpack.c.bf16 %v1892_v22, %v1887_v6  ;;  %v1068_v22 = vld [vmem:[%s2580_s5] sm:$0xff] }
 0x4e7   : > { %v1914_v28 = vpack.i.bf16 %v1012_v26, %v1011_v25  ;;  %v1909_v30 = vpack.i.bf16 %v1016_v24, %v996_v27  ;;  %v1733_v32 = vpack.c.bf16 %v996_v27, %v995_v18  ;;  %v1070_v24 = vld [vmem:[%s2580_s5 + $0x10] sm:$0xff]  ;;  %v1071_v25 = vld [vmem:[%s2580_s5 + $0x18] sm:$0xff]  ;;  %v1646_v26 = vld [vmem:[%s2584_s9 + $0x3] ss:$4 sm:$0x3] }
 0x4e8   : > { %v1276_v27 = vrot.slane %v1646_v26, %v2198_v29 }
 0x4e9   : > { %v1896_v34 = vpop.permute.xlu1 %1895  ;;  %1915 = vrot.lane.b32.xlu1 %v1914_v28, %s2004_s30  ;;  %1910 = vrot.lane.b32.xlu0 %v1909_v30, %s2004_s30  ;;  %v1280_v28 = vrot.slane %v1646_v26, %v2203_v31 }
 0x4ea   : > { %v1898_v35 = vunpack.i.h.bf16 %v1896_v34  ;;  %v1897_v36 = vunpack.i.l.bf16 %v1896_v34  ;;  %1734 = vmatprep.subr.bf16.mxu0 %v1733_v32 }
 0x4eb   : > { %1737 = vmatpush1.bf16.msk.msra.mxu0 %vm1736_vm9, %v1735_v33  ;;  %v1901_v37 = vpop.permute.xlu0 %1900 }
 0x4ec   : > { %v1017_v38 = vsel %vm994_vm7, %v1898_v35, 0.0  ;;  %v1903_v39 = vunpack.i.h.bf16 %v1901_v37  ;;  %v1902_v41 = vunpack.i.l.bf16 %v1901_v37  ;;  %v997_v44 = vsel %vm994_vm7, %v1897_v36, %v1898_v35 }
 0x4ed   : > { %v1919_v45 = vpack.i.bf16 %v1017_v38, %v997_v44  ;;  %v1013_v56 = vsel %vm994_vm7, 0.0, %v1897_v36 }
 0x4ee   : > { %v1018_v46 = vsel %vm994_vm7, %v1903_v39, 0.0  ;;  %v998_v47 = vsel %vm994_vm7, %v1902_v41, %v1903_v39  ;;  %v1014_v48 = vsel %vm994_vm7, 0.0, %v1902_v41  ;;  %v1740_v55 = vpack.c.bf16 %v1902_v41, %v1897_v36 }
 0x4ef   : > { %1920 = vrot.lane.b32.xlu0 %v1919_v45, %s2004_s30  ;;  %v1924_v50 = vpack.i.bf16 %v1018_v46, %v998_v47  ;;  %v1738_v53 = vpack.c.bf16 %v998_v47, %v997_v44  ;;  %v1929_v57 = vpack.i.bf16 %v1014_v48, %v1013_v56 }
 0x4f1   : > { %1925 = vrot.lane.b32.xlu1 %v1924_v50, %s2004_s30  ;;  %1739 = vmatprep.subr.bf16.mxu0 %v1738_v53 }
 0x4f2   : > { %1742 = vmatpush1.bf16.msk.msra.mxu0 %vm1736_vm9, %v1740_v55 }
 0x4f3   : > { %1930 = vrot.lane.b32.xlu0 %v1929_v57, %s2004_s30  ;;  %1744 = vmatprep.subr.bf16.mxu0 %v2331_v5 }
 0x4f5   : > { %1078 = vperm.xlu1 %1853, %v1072_v58  }
 0x4f6   : > { %1746 = vmatpush1.bf16.msra.mxu0 %v2333_v54 }
 0x4f7   : > { %1083 = vperm.xlu0 %1852, %v1073_v40   ;;  %1748 = vmatprep.subr.bf16.mxu0 %v1747_v15 }
 0x4f9   : > { %1088 = vperm.xlu1 %1853, %v1074_v42  }
 0x4fa   : > { %1750 = vmatpush1.bf16.msra.mxu0 %v1749_v16 }
 0x4fb   : > { %1093 = vperm.xlu0 %1852, %v1075_v59  }
 0x4fd   : > { %1281 = vrot.lane.b32.xlu1 %v1276_v27, %s2005_s17 }
 0x4ff   : > { %1283 = vrot.lane.b32.xlu0 %v1280_v28, %s2005_s17 }
 0x555   : > { %v1906_v62 = vpop.permute.xlu1 %1905 }
 0x556   : > { %v1908_v63 = vunpack.i.h.bf16 %v1906_v62  ;;  %v1907_v0 = vunpack.i.l.bf16 %v1906_v62 }
 0x558   : > { %v1053_v10 = vsel %vm1051_vm10, %v1907_v0, %v1908_v63 }
 0x55b   : > { %v1916_v3 = vpop.permute.xlu1 %1915  ;;  %v1911_v5 = vpop.permute.xlu0 %1910 }
 0x55c   : > { %v1918_v54 = vunpack.i.h.bf16 %v1916_v3  ;;  %v1917_v49 = vunpack.i.l.bf16 %v1916_v3  ;;  %v1913_v52 = vunpack.i.h.bf16 %v1911_v5  ;;  %v1912_v7 = vunpack.i.l.bf16 %v1911_v5 }
 0x55e   : > { %v1052_v8 = vsel %vm1051_vm10, %v1917_v49, %v1907_v0  ;;  %v1054_v9 = vsel %vm1051_vm10, %v1918_v54, %v1912_v7  ;;  %v1055_v11 = vsel %vm1051_vm10, %v1912_v7, %v1913_v52 }
 0x55f   : > { %v1753_v12 = vpack.c.bf16 %v1054_v9, %v1052_v8  ;;  %v1751_v13 = vpack.c.bf16 %v1055_v11, %v1053_v10  ;;  %v1645_v9 = vld [vmem:[%s2584_s9 + $0x2] ss:$4 sm:$0x3] }
 0x561   : > { %v1921_v60 = vpop.permute.xlu0 %1920  ;;  %1752 = vmatprep.subr.bf16.mxu0 %v1751_v13 }
 0x562   : > { %v1923_v14 = vunpack.i.h.bf16 %v1921_v60  ;;  %v1922_v61 = vunpack.i.l.bf16 %v1921_v60  ;;  %1754 = vmatpush1.bf16.msra.mxu0 %v1753_v12  ;;  %v1261_v60 = vrot.slane %v1645_v9, %v2203_v31 }
 0x563   : > { %v1926_v51 = vpop.permute.xlu1 %1925 }
 0x564   : > { %v1928_v2 = vunpack.i.h.bf16 %v1926_v51  ;;  %v1927_v15 = vunpack.i.l.bf16 %v1926_v51  ;;  %v1057_v6 = vsel %vm1051_vm10, %v1922_v61, %v1923_v14 }
 0x565   : > { %v1931_v16 = vpop.permute.xlu0 %1930 }
 0x566   : > { %v1933_v4 = vunpack.i.h.bf16 %v1931_v16  ;;  %v1932_v1 = vunpack.i.l.bf16 %v1931_v16  ;;  %v1059_v17 = vsel %vm1051_vm10, %v1927_v15, %v1928_v2  ;;  %v1257_v16 = vrot.slane %v1645_v9, %v2198_v29 }
 0x567   : > { %v1755_v18 = vpack.c.bf16 %v1059_v17, %v1057_v6 }
 0x568   : > { %v1058_v19 = vsel %vm1051_vm10, %v1933_v4, %v1927_v15  ;;  %v1056_v20 = vsel %vm1051_vm10, %v1932_v1, %v1922_v61 }
 0x569   : > { %v1757_v21 = vpack.c.bf16 %v1058_v19, %v1056_v20  ;;  %1756 = vmatprep.subr.bf16.mxu0 %v1755_v18 }
 0x56b   : > { %1758 = vmatpush1.bf16.msra.mxu0 %v1757_v21 }
 0x56e   : > { %1671 = vmatmul.mubr.msk.f32.vlgmr.msra.gmra.mrb[8].mxu0 %vm456_vm3, %v1068_v22 }
 0x56f   : > { %1178 = vmatprep.mubr.f32.mxu0 %v1998_v43 }
 0x572   : > { %1672 = vmatmul.mubr.msk.f32.gmra.mrb[10].mxu0 %vm456_vm3, %v1069_v23 }
 0x573   : > { %1184 = vmatprep.mubr.f32.mxu0 %v1998_v43 }
 0x574   : > { %v1079_v30 = vpop.permute.xlu1 %1078 }
 0x576   : > { %1673 = vmatmul.mubr.msk.f32.gmra.mrb[12].mxu0 %vm456_vm3, %v1070_v24  ;;  %v1084_v37 = vpop.permute.xlu0 %1083 }
 0x577   : > { %1190 = vmatprep.mubr.f32.mxu0 %v1998_v43 }
 0x578   : > { %v1089_v47 = vpop.permute.xlu1 %1088 }
 0x57a   : > { %1674 = vmatmul.mubr.msk.f32.gmra.mrb[14].mxu0 %vm456_vm3, %v1071_v25  ;;  %v1094_v42 = vpop.permute.xlu0 %1093 }
 0x57c   : > { %v1282_v7 = vpop.permute.xlu1 %1281 }
 0x57e   : > { %v1284_v8 = vpop.permute.xlu0 %1283 }
 0x57f   : > { %v1286_v11 = vsel %vm1285_vm11, %v1282_v7, %v1284_v8 }
 0x641   : > { %v1174_v32 = vpop.f32.mrb[8].mxu0 }
 0x642   : > { %v1175_v33 = vadd.f32 %v1174_v32, %v1079_v30  ;;  %v1176_v34 = vpop.f32.mrb[9].mxu0 }
 0x643   : > { %v1177_v35 = vadd.f32 %v1176_v34, %v1079_v30 }
 0x644   : > { %v1197_v36 = vmax.f32 %v1175_v33, 0.0 }
 0x645   : > { %v1198_v38 = vmax.f32 %v1177_v35, 0.0  ;;  %v1180_v39 = vpop.f32.mrb[10].mxu0 }
 0x646   : > { %v1181_v41 = vadd.f32 %v1180_v39, %v1084_v37  ;;  %v1182_v44 = vpop.f32.mrb[11].mxu0  ;;  %1213 = vrot.lane.b32.xlu1 %v1197_v36, %s2000_s23 }
 0x647   : > { %v1183_v45 = vadd.f32 %v1182_v44, %v1084_v37  ;;  %1215 = vrot.lane.b32.xlu0 %v1198_v38, %s2000_s23 }
 0x648   : > { %v1199_v46 = vmax.f32 %v1181_v41, 0.0 }
 0x649   : > { %v1200_v48 = vmax.f32 %v1183_v45, 0.0  ;;  %v1186_v50 = vpop.f32.mrb[12].mxu0 }
 0x64a   : > { %v2421_v53 = vpack.c.bf16 %v1199_v46, %v1197_v36  ;;  %v1187_v55 = vadd.f32 %v1186_v50, %v1089_v47  ;;  %v1188_v56 = vpop.f32.mrb[13].mxu0  ;;  %1217 = vrot.lane.b32.xlu1 %v1199_v46, %s2000_s23 }
 0x64b   : > { %v2424_v57 = vpack.c.bf16 %v1200_v48, %v1198_v38  ;;  %v1189_v58 = vadd.f32 %v1188_v56, %v1089_v47  ;;  %1219 = vrot.lane.b32.xlu0 %v1200_v48, %s2000_s23 }
 0x64c   : > { %v1201_v40 = vmax.f32 %v1187_v55, 0.0 }
 0x64d   : > { %v1202_v59 = vmax.f32 %v1189_v58, 0.0  ;;  %v1192_v62 = vpop.f32.mrb[14].mxu0 }
 0x64e   : > { %v1193_v63 = vadd.f32 %v1192_v62, %v1094_v42  ;;  %v1194_v0 = vpop.f32.mrb[15].mxu0  ;;  %1221 = vrot.lane.b32.xlu1 %v1201_v40, %s2000_s23 }
 0x64f   : > { %v1195_v3 = vadd.f32 %v1194_v0, %v1094_v42  ;;  %1223 = vrot.lane.b32.xlu0 %v1202_v59, %s2000_s23 }
 0x650   : > { %v1203_v5 = vmax.f32 %v1193_v63, 0.0 }
 0x651   : > { %v1204_v54 = vmax.f32 %v1195_v3, 0.0  ;;  %v1360_v3 = vld [vmem:[%s2583_s8 + $0x8] sm:$0xff] }
 0x652   : > { %v2429_v49 = vpack.c.bf16 %v1203_v5, %v1201_v40  ;;  %1225 = vrot.lane.b32.xlu1 %v1203_v5, %s2000_s23  ;;  %v1359_v5 = vld [vmem:[%s2583_s8] sm:$0xff] }
 0x653   : > { %v2432_v52 = vpack.c.bf16 %v1204_v54, %v1202_v59  ;;  %1227 = vrot.lane.b32.xlu0 %v1204_v54, %s2000_s23  ;;  %s2006_s23 = smov 124   ;;  %v1362_v54 = vld [vmem:[%s2583_s8 + $0x18] sm:$0xff] }
 0x6b8   : > { %v1214_v10 = vpop.permute.xlu1 %1213 }
 0x6b9   : > { %v1216_v12 = vpop.permute.xlu0 %1215  ;;  %v1245_v13 = vsel %vm691_vm4, 0.0, %v1214_v10 }
 0x6ba   : > { %v1229_v14 = vsel %vm691_vm4, %v1214_v10, %v1216_v12  ;;  %v1249_v61 = vsel %vm691_vm4, %v1216_v12, 0.0  ;;  %v1290_v4 = vmul.f32 %v1282_v7, %v1245_v13  ;;  %v1264_v26 = vmul.f32 %v1257_v16, %v1245_v13 }
 0x6bb   : > { %v1291_v51 = vmul.f32 %v1286_v11, %v1229_v14  ;;  %v1292_v2 = vmul.f32 %v1284_v8, %v1249_v61  ;;  %v1265_v18 = vmul.f32 %v1261_v60, %v1229_v14 }
 0x6bc   : > { %v1218_v15 = vpop.permute.xlu1 %1217 }
 0x6bd   : > { %v1246_v1 = vsel %vm691_vm4, 0.0, %v1218_v15  ;;  %v1220_v6 = vpop.permute.xlu0 %1219  ;;  %v1934_v17 = vpack.i.bf16 %v1292_v2, %v1291_v51 }
 0x6be   : > { %v1293_v19 = vmul.f32 %v1282_v7, %v1246_v1  ;;  %v1230_v20 = vsel %vm691_vm4, %v1218_v15, %v1220_v6  ;;  %v1250_v31 = vsel %vm691_vm4, %v1220_v6, 0.0  ;;  %v1266_v21 = vmul.f32 %v1257_v16, %v1246_v1 }
 0x6bf   : > { %v1267_v22 = vmul.f32 %v1261_v60, %v1230_v20  ;;  %v1294_v23 = vmul.f32 %v1286_v11, %v1230_v20  ;;  %v1295_v24 = vmul.f32 %v1284_v8, %v1250_v31  ;;  %1935 = vrot.lane.b32.xlu1 %v1934_v17, %s2006_s23 }
 0x6c0   : > { %v1222_v25 = vpop.permute.xlu1 %1221  ;;  %v1939_v29 = vpack.i.bf16 %v1293_v19, %v1290_v4  ;;  %v1761_v35 = vpack.c.bf16 %v1266_v21, %v1264_v26  ;;  %v1356_v26 = vld [vmem:[%s2582_s7 + $0x8] sm:$0xff] }
 0x6c1   : > { %v1224_v27 = vpop.permute.xlu0 %1223  ;;  %v1944_v28 = vpack.i.bf16 %v1295_v24, %v1294_v23  ;;  %v1759_v30 = vpack.c.bf16 %v1267_v22, %v1265_v18  ;;  %v1247_v32 = vsel %vm691_vm4, 0.0, %v1222_v25 }
 0x6c2   : > { %v1231_v33 = vsel %vm691_vm4, %v1222_v25, %v1224_v27  ;;  %v1251_v34 = vsel %vm691_vm4, %v1224_v27, 0.0  ;;  %v1296_v39 = vmul.f32 %v1282_v7, %v1247_v32  ;;  %v1268_v59 = vmul.f32 %v1257_v16, %v1247_v32  ;;  %v1357_v27 = vld [vmem:[%s2582_s7 + $0x10] sm:$0xff] }
 0x6c3   : > { %v1297_v36 = vmul.f32 %v1286_v11, %v1231_v33  ;;  %v1298_v37 = vmul.f32 %v1284_v8, %v1251_v34  ;;  %1940 = vrot.lane.b32.xlu1 %v1939_v29, %s2006_s23  ;;  %1945 = vrot.lane.b32.xlu0 %v1944_v28, %s2006_s23  ;;  %v1269_v46 = vmul.f32 %v1261_v60, %v1231_v33  ;;  %v1355_v29 = vld [vmem:[%s2582_s7] sm:$0xff]  ;;  %v1358_v28 = vld [vmem:[%s2582_s7 + $0x18] sm:$0xff] }
 0x6c4   : > { %1760 = vmatprep.subr.bf16.mxu1 %v1759_v30  ;;  %v1226_v38 = vpop.permute.xlu1 %1225 }
 0x6c5   : > { %1762 = vmatpush1.bf16.msra.mxu1 %v1761_v35  ;;  %v1248_v41 = vsel %vm691_vm4, 0.0, %v1226_v38  ;;  %v1228_v44 = vpop.permute.xlu0 %1227  ;;  %v1949_v45 = vpack.i.bf16 %v1298_v37, %v1297_v36 }
 0x6c6   : > { %v1299_v47 = vmul.f32 %v1282_v7, %v1248_v41  ;;  %v1232_v48 = vsel %vm691_vm4, %v1226_v38, %v1228_v44  ;;  %v1252_v50 = vsel %vm691_vm4, %v1228_v44, 0.0  ;;  %v1270_v55 = vmul.f32 %v1257_v16, %v1248_v41  ;;  %v1361_v7 = vld [vmem:[%s2583_s8 + $0x10] sm:$0xff] }
 0x6c7   : > { %v1271_v56 = vmul.f32 %v1261_v60, %v1232_v48  ;;  %v1300_v58 = vmul.f32 %v1286_v11, %v1232_v48  ;;  %v1301_v40 = vmul.f32 %v1284_v8, %v1252_v50  ;;  %1950 = vrot.lane.b32.xlu0 %v1949_v45, %s2006_s23 }
 0x6c8   : > { %v1959_v42 = vpack.i.bf16 %v1299_v47, %v1296_v39  ;;  %v1765_v0 = vpack.c.bf16 %v1270_v55, %v1268_v59 }
 0x6c9   : > { %v1954_v62 = vpack.i.bf16 %v1301_v40, %v1300_v58  ;;  %v1763_v63 = vpack.c.bf16 %v1271_v56, %v1269_v46 }
 0x6cb   : > { %1960 = vrot.lane.b32.xlu0 %v1959_v42, %s2006_s23  ;;  %1955 = vrot.lane.b32.xlu1 %v1954_v62, %s2006_s23 }
 0x6cc   : > { %1764 = vmatprep.subr.bf16.mxu1 %v1763_v63 }
 0x6cd   : > { %1766 = vmatpush1.bf16.msra.mxu1 %v1765_v0 }
 0x6ce   : > { %1768 = vmatprep.subr.bf16.mxu1 %v2424_v57 }
 0x6cf   : > { %1370 = vperm.xlu0 %1852, %v1360_v3   ;;  %1365 = vperm.xlu1 %1853, %v1359_v5  }
 0x6d1   : > { %1770 = vmatpush1.bf16.msra.mxu1 %v2421_v53 }
 0x6d2   : > { %1772 = vmatprep.subr.bf16.mxu1 %v2432_v52 }
 0x6d3   : > { %1380 = vperm.xlu0 %1852, %v1362_v54   ;;  %1375 = vperm.xlu1 %1853, %v1361_v7  }
 0x6d5   : > { %1774 = vmatpush1.bf16.msra.mxu1 %v2429_v49 }
 0x731   : > { %v1936_v8 = vpop.permute.xlu1 %1935 }
 0x732   : > { %v1938_v57 = vunpack.i.h.bf16 %v1936_v8  ;;  %v1937_v9 = vunpack.i.l.bf16 %v1936_v8 }
 0x734   : > { %v1340_v52 = vsel %vm1338_vm12, %v1937_v9, %v1938_v57 }
 0x735   : > { %v1946_v10 = vpop.permute.xlu0 %1945  ;;  %v1941_v11 = vpop.permute.xlu1 %1940 }
 0x736   : > { %v1948_v12 = vunpack.i.h.bf16 %v1946_v10  ;;  %v1947_v13 = vunpack.i.l.bf16 %v1946_v10  ;;  %v1943_v60 = vunpack.i.h.bf16 %v1941_v11  ;;  %v1942_v14 = vunpack.i.l.bf16 %v1941_v11 }
 0x738   : > { %v1341_v61 = vsel %vm1338_vm12, %v1943_v60, %v1947_v13  ;;  %v1339_v53 = vsel %vm1338_vm12, %v1942_v14, %v1937_v9  ;;  %v1342_v51 = vsel %vm1338_vm12, %v1947_v13, %v1948_v12 }
 0x739   : > { %v1777_v2 = vpack.c.bf16 %v1341_v61, %v1339_v53  ;;  %v1951_v49 = vpop.permute.xlu0 %1950  ;;  %v1775_v15 = vpack.c.bf16 %v1342_v51, %v1340_v52 }
 0x73a   : > { %v1953_v16 = vunpack.i.h.bf16 %v1951_v49  ;;  %v1952_v4 = vunpack.i.l.bf16 %v1951_v49 }
 0x73b   : > { %1776 = vmatprep.subr.bf16.mxu1 %v1775_v15 }
 0x73c   : > { %1778 = vmatpush1.bf16.msra.mxu1 %v1777_v2  ;;  %v1344_v22 = vsel %vm1338_vm12, %v1952_v4, %v1953_v16 }
 0x73d   : > { %v1961_v1 = vpop.permute.xlu0 %1960  ;;  %v1956_v6 = vpop.permute.xlu1 %1955 }
 0x73e   : > { %v1963_v17 = vunpack.i.h.bf16 %v1961_v1  ;;  %v1962_v18 = vunpack.i.l.bf16 %v1961_v1  ;;  %v1958_v19 = vunpack.i.h.bf16 %v1956_v6  ;;  %v1957_v20 = vunpack.i.l.bf16 %v1956_v6 }
 0x740   : > { %v1343_v31 = vsel %vm1338_vm12, %v1962_v18, %v1952_v4  ;;  %v1345_v21 = vsel %vm1338_vm12, %v1963_v17, %v1957_v20  ;;  %v1346_v23 = vsel %vm1338_vm12, %v1957_v20, %v1958_v19 }
 0x741   : > { %v1781_v24 = vpack.c.bf16 %v1345_v21, %v1343_v31  ;;  %v1779_v25 = vpack.c.bf16 %v1346_v23, %v1344_v22 }
 0x743   : > { %1780 = vmatprep.subr.bf16.mxu1 %v1779_v25 }
 0x744   : > { %1782 = vmatpush1.bf16.msra.mxu1 %v1781_v24 }
 0x747   : > { %1675 = vmatmul.mubr.msk.f32.vlgmr.msra.gmra.mrb[8].mxu1 %vm456_vm3, %v1355_v29 }
 0x748   : > { %1465 = vmatprep.mubr.f32.mxu1 %v1998_v43 }
 0x74b   : > { %1676 = vmatmul.mubr.msk.f32.gmra.mrb[10].mxu1 %vm456_vm3, %v1356_v26 }
 0x74c   : > { %1471 = vmatprep.mubr.f32.mxu1 %v1998_v43 }
 0x74e   : > { %v1366_v30 = vpop.permute.xlu1 %1365  ;;  %v1371_v37 = vpop.permute.xlu0 %1370 }
 0x74f   : > { %1677 = vmatmul.mubr.msk.f32.gmra.mrb[12].mxu1 %vm456_vm3, %v1357_v27 }
 0x750   : > { %1477 = vmatprep.mubr.f32.mxu1 %v1998_v43 }
 0x752   : > { %v1376_v55 = vpop.permute.xlu1 %1375  ;;  %v1381_v62 = vpop.permute.xlu0 %1380 }
 0x753   : > { %1678 = vmatmul.mubr.msk.f32.gmra.mrb[14].mxu1 %vm456_vm3, %v1358_v28 }
 0x81a   : > { %v1461_v32 = vpop.f32.mrb[8].mxu1 }
 0x81b   : > { %v2501_v33 = vadd.f32 %v1461_v32, %v1366_v30  ;;  %v1463_v34 = vpop.f32.mrb[9].mxu1 }
 0x81c   : > { %v2503_v35 = vadd.f32 %v1463_v34, %v1366_v30 }
 0x81d   : > { %v1500_v36 = vmul.f32 %v2501_v33, %v2501_v33 }
 0x81e   : > { %v1467_v38 = vpop.f32.mrb[10].mxu1  ;;  %v1484_v43 = vadd.f32 %v2503_v35, %v2501_v33  ;;  %v1501_v39 = vmul.f32 %v2503_v35, %v2503_v35 }
 0x81f   : > { %v2511_v41 = vadd.f32 %v1467_v38, %v1371_v37  ;;  %v1469_v44 = vpop.f32.mrb[11].mxu1  ;;  %v1980_v38 = vld [vmem:[%s2078_s18] sm:$0xff] }
 0x820   : > { %v2513_v45 = vadd.f32 %v1469_v44, %v1371_v37  ;;  %1485 = vadd.xlane.f32.xlu1 %v1484_v43  ;;  %v1508_v46 = vadd.f32 %v1501_v39, %v1500_v36  ;;  %v1981_v39 = vld [vmem:[%s2078_s18 + $0x8] sm:$0xff] }
 0x821   : > { %v1502_v47 = vmul.f32 %v2511_v41, %v2511_v41 }
 0x822   : > { %v1473_v48 = vpop.f32.mrb[12].mxu1  ;;  %1509 = vadd.xlane.f32.xlu0 %v1508_v46  ;;  %v1503_v50 = vmul.f32 %v2513_v45, %v2513_v45  ;;  %v1487_v42 = vadd.f32 %v2513_v45, %v2511_v41 }
 0x823   : > { %v1475_v56 = vpop.f32.mrb[13].mxu1  ;;  %v2519_v58 = vadd.f32 %v1473_v48, %v1376_v55 }
 0x824   : > { %v2521_v40 = vadd.f32 %v1475_v56, %v1376_v55  ;;  %v1511_v59 = vadd.f32 %v1503_v50, %v1502_v47  ;;  %v1982_v56 = vld [vmem:[%s2078_s18 + $0x10] sm:$0xff] }
 0x825   : > { %v1504_v7 = vmul.f32 %v2519_v58, %v2519_v58 }
 0x826   : > { %v1479_v63 = vpop.f32.mrb[14].mxu1  ;;  %1488 = vadd.xlane.f32.xlu0 %v1487_v42  ;;  %1512 = vadd.xlane.f32.xlu1 %v1511_v59  ;;  %v1490_v54 = vadd.f32 %v2521_v40, %v2519_v58  ;;  %v1505_v8 = vmul.f32 %v2521_v40, %v2521_v40  ;;  %v1983_v59 = vld [vmem:[%s2078_s18 + $0x18] sm:$0xff] }
 0x827   : > { %v2525_v0 = vadd.f32 %v1479_v63, %v1381_v62  ;;  %v1481_v3 = vpop.f32.mrb[15].mxu1 }
 0x828   : > { %v2527_v5 = vadd.f32 %v1481_v3, %v1381_v62  ;;  %v1514_v11 = vadd.f32 %v1505_v8, %v1504_v7 }
 0x829   : > { %v1506_v9 = vmul.f32 %v2525_v0, %v2525_v0 }
 0x82a   : > { %1491 = vadd.xlane.f32.xlu0 %v1490_v54  ;;  %v1493_v57 = vadd.f32 %v2527_v5, %v2525_v0  ;;  %v1507_v10 = vmul.f32 %v2527_v5, %v2527_v5 }
 0x82c   : > { %1494 = vadd.xlane.f32.xlu1 %v1493_v57  ;;  %v1517_v12 = vadd.f32 %v1507_v10, %v1506_v9 }
 0x82e   : > { %1515 = vadd.xlane.f32.xlu0 %v1514_v11  ;;  %v1984_v11 = vld [vmem:[%s2078_s18 + $0x20] sm:$0xff] }
 0x830   : > { %1518 = vadd.xlane.f32.xlu1 %v1517_v12 }
 0x8ad   : > { %v1486_v13 = vpop.xlane.xlu1 %1485 }
 0x8ae   : > { %v1496_v60 = vmul.f32 0.00390625, %v1486_v13 }
 0x8af   : > { %v1510_v14 = vpop.xlane.xlu0 %1509 }
 0x8b0   : > { %v1520_v61 = vmul.f32 0.00390625, %v1510_v14  ;;  %v1524_v53 = vmul.f32 %v1496_v60, %v1496_v60  ;;  %v1532_v26 = vsub.f32 %v2501_v33, %v1496_v60  ;;  %v1533_v27 = vsub.f32 %v2503_v35, %v1496_v60 }
 0x8b2   : > { %v1528_v52 = vsub.f32 %v1520_v61, %v1524_v53  ;;  %v1986_v53 = vld [vmem:[%s2078_s18 + $0x30] sm:$0xff] }
 0x8b3   : > { %v1489_v51 = vpop.xlane.xlu0 %1488  ;;  %v1513_v2 = vpop.xlane.xlu1 %1512 }
 0x8b4   : > { %v1540_v49 = vadd.f32 0.001, %v1528_v52  ;;  %v1497_v15 = vmul.f32 0.00390625, %v1489_v51  ;;  %v1521_v4 = vmul.f32 0.00390625, %v1513_v2 }
 0x8b6   : > { %1972 = vrsqrt.f32 %v1540_v49  ;;  %v1525_v16 = vmul.f32 %v1497_v15, %v1497_v15  ;;  %v1534_v46 = vsub.f32 %v2511_v41, %v1497_v15  ;;  %v1535_v47 = vsub.f32 %v2513_v45, %v1497_v15 }
 0x8b7   : > { %v1492_v1 = vpop.xlane.xlu0 %1491 }
 0x8b8   : > { %v1529_v6 = vsub.f32 %v1521_v4, %v1525_v16  ;;  %v1498_v17 = vmul.f32 0.00390625, %v1492_v1 }
 0x8b9   : > { %v1495_v18 = vpop.xlane.xlu1 %1494 }
 0x8ba   : > { %v1541_v19 = vadd.f32 0.001, %v1529_v6  ;;  %v1499_v20 = vmul.f32 0.00390625, %v1495_v18  ;;  %v1526_v21 = vmul.f32 %v1498_v17, %v1498_v17  ;;  %v1536_v54 = vsub.f32 %v2519_v58, %v1498_v17  ;;  %v1985_v58 = vld [vmem:[%s2078_s18 + $0x28] sm:$0xff] }
 0x8bb   : > { %v1516_v31 = vpop.xlane.xlu0 %1515  ;;  %v1537_v41 = vsub.f32 %v2521_v40, %v1498_v17 }
 0x8bc   : > { %1974 = vrsqrt.f32 %v1541_v19  ;;  %v1522_v22 = vmul.f32 0.00390625, %v1516_v31  ;;  %v1527_v25 = vmul.f32 %v1499_v20, %v1499_v20  ;;  %v1538_v45 = vsub.f32 %v2525_v0, %v1499_v20  ;;  %v1987_v0 = vld [vmem:[%s2078_s18 + $0x38] sm:$0xff] }
 0x8bd   : > { %v1519_v23 = vpop.xlane.xlu1 %1518  ;;  %v1539_v8 = vsub.f32 %v2527_v5, %v1499_v20 }
 0x8be   : > { %v1530_v24 = vsub.f32 %v1522_v22, %v1526_v21  ;;  %v1523_v29 = vmul.f32 0.00390625, %v1519_v23 }
 0x8c0   : > { %v1973_v28 = vpop.eup %1972  ;;  %v1542_v30 = vadd.f32 0.001, %v1530_v24  ;;  %v1531_v32 = vsub.f32 %v1523_v29, %v1527_v25 }
 0x8c1   : > { %v1548_v34 = vmul.f32 %v1973_v28, %v1532_v26  ;;  %v1549_v36 = vmul.f32 %v1973_v28, %v1533_v27 }
 0x8c2   : > { %1976 = vrsqrt.f32 %v1542_v30  ;;  %v1543_v37 = vadd.f32 0.001, %v1531_v32 }
 0x8c3   : > { %v1556_v43 = vadd.f32 %v1980_v38, %v1548_v34  ;;  %v1557_v44 = vadd.f32 %v1981_v39, %v1549_v36 }
 0x8c4   : > { %1978 = vrsqrt.f32 %v1543_v37 }
 0x8c5   : > { %v1564_v33 = vmax.f32 %v1556_v43, 0.0  ;;  %v1565_v35 = vmax.f32 %v1557_v44, 0.0 }
 0x8c6   : > { %v1975_v48 = vpop.eup %1974 }
 0x8c7   : > { %1572 = vst [vmem:[%s2550_s24] sm:$0xff] %v1564_v33  ;;  %1573 = vst [vmem:[%s2550_s24 + $0x8] sm:$0xff] %v1565_v35  ;;  %v1550_v50 = vmul.f32 %v1975_v48, %v1534_v46  ;;  %v1551_v55 = vmul.f32 %v1975_v48, %v1535_v47 }
 0x8c9   : > { %v1558_v42 = vadd.f32 %v1982_v56, %v1550_v50  ;;  %v1559_v62 = vadd.f32 %v1983_v59, %v1551_v55 }
 0x8cb   : > { %v1566_v63 = vmax.f32 %v1558_v42, 0.0  ;;  %v1567_v3 = vmax.f32 %v1559_v62, 0.0 }
 0x8cc   : > { %v1977_v7 = vpop.eup %1976 }
 0x8cd   : > { %1574 = vst [vmem:[%s2550_s24 + $0x10] sm:$0xff] %v1566_v63  ;;  %1575 = vst [vmem:[%s2550_s24 + $0x18] sm:$0xff] %v1567_v3  ;;  %v1552_v57 = vmul.f32 %v1977_v7, %v1536_v54  ;;  %v1553_v9 = vmul.f32 %v1977_v7, %v1537_v41 }
 0x8ce   : > { %v1979_v10 = vpop.eup %1978 }
 0x8cf   : > { %v1560_v12 = vadd.f32 %v1984_v11, %v1552_v57  ;;  %v1561_v40 = vadd.f32 %v1985_v58, %v1553_v9  ;;  %v1554_v13 = vmul.f32 %v1979_v10, %v1538_v45  ;;  %v1555_v60 = vmul.f32 %v1979_v10, %v1539_v8 }
 0x8d1   : > { %v1568_v14 = vmax.f32 %v1560_v12, 0.0  ;;  %v1569_v61 = vmax.f32 %v1561_v40, 0.0  ;;  %v1562_v52 = vadd.f32 %v1986_v53, %v1554_v13  ;;  %v1563_v51 = vadd.f32 %v1987_v0, %v1555_v60 }
 0x8d3   : > { %1576 = vst [vmem:[%s2550_s24 + $0x20] sm:$0xff] %v1568_v14  ;;  %1577 = vst [vmem:[%s2550_s24 + $0x28] sm:$0xff] %v1569_v61  ;;  %v1570_v5 = vmax.f32 %v1562_v52, 0.0  ;;  %v1571_v2 = vmax.f32 %v1563_v51, 0.0 }
 0x8d5   : > { %1578 = vst [vmem:[%s2550_s24 + $0x30] sm:$0xff] %v1570_v5  ;;  %1579 = vst [vmem:[%s2550_s24 + $0x38] sm:$0xff] %v1571_v2 }
 0x8d6 PF: > { %s20_s13 = sadd.s32 1, %s1994_s13  }
 0x8d7   : > { %p17_p4 = scmp.ge.s32.totalorder %s20_s13, 4  }
 0x8d9   :  { %19 = sbr.rel (!%p17_p4) target bundleno = 1 (0x1), region = 93 }

</bundles_post_ra>
